<compile_context>
chip_gen: v7x
topology: tpu7x:2x2x1
jax: 0.10.0
libtpu: 0.0.40
codegen_flags: <defaults>
</compile_context>

<pallas_src>
import functools

import numpy as np
import jax
import jax.numpy as jnp
from jax import lax
from jax.experimental import pallas as pl
from jax.experimental.pallas import tpu as pltpu


def _residual_block_kernel(x_ref, w1_ref, b1_ref, w2_ref, b2_ref, mask_ref,
                           o_ref, *scratch, img_w, no_mask_taps, use_im2col):
    """One batch-block (batch_block packed images) per grid step.

    x_ref     : (C, P)        input, P = batch_block*H*W packed on the lane axis
    w1_ref    : (C, 9*Cp)     conv1 weights (BN1 scale folded), tap-major,
                              per-tap channel stride Cp (sublane aligned)
    b1_ref    : (C, 1)        conv1 bias + BN1 shift (f32)
    w2_ref    : (C, 9*Cp)     conv2 weights (BN2 scale folded)
    b2_ref    : (C, 1)        conv2 bias + BN2 shift (f32)
    mask_ref  : (9, P)        per-tap validity mask, tiled per packed image
    o_ref     : (C, P)        output
    scratch   : xpad (Cp, P+2*halo), ypad (Cp, P+2*halo)[, patch (9*Cp, P)]
    """
    c, p = x_ref.shape
    xpad_ref, ypad_ref = scratch[0], scratch[1]
    cp = xpad_ref.shape[0]
    halo = (xpad_ref.shape[1] - p) // 2        # lane-tile aligned, >= W+1
    cdt = x_ref.dtype                          # MXU/compute dtype (f32 or bf16)
    # Tap order = (ky, kx) row-major; matches the wrapper's weight/mask layout.
    offsets = [(ky - 1) * img_w + (kx - 1) for ky in range(3) for kx in range(3)]

    zero_halo = jnp.zeros((cp, halo), cdt)

    def stage(dst_ref, val):
        # Zero only the two small end halos (+ the zero pad rows when C < Cp),
        # then one lane-dense interior store of the packed activations.  Done
        # every step so there is no cross-grid-step scratch state (safe under
        # megacore "parallel" partitioning of the batch-block axis).
        dst_ref[:, 0:halo] = zero_halo
        dst_ref[:, halo + p:halo + p + halo] = zero_halo
        if cp != c:
            dst_ref[c:cp, :] = jnp.zeros((cp - c, dst_ref.shape[1]), cdt)
        dst_ref[0:c, halo:halo + p] = val

    def conv(src_ref, w_ref):
        def tap_rhs(t, d):
            shard = src_ref[:, halo + d:halo + d + p]        # (Cp, P)
            if t not in no_mask_taps:
                # Kills out-of-image reads *and* cross-image leakage between
                # packed images (mask is per destination-lane image position).
                shard = shard * mask_ref[t:t + 1, :]
            return shard

        if use_im2col:
            # Small C: fold the 9 taps into the contraction dim (K = 9*Cp) and
            # do ONE MXU matmul.  Every patch store is a full, sublane-aligned
            # Cp-row store thanks to the padded per-tap stride.
            patch_ref = scratch[2]
            for t, d in enumerate(offsets):
                patch_ref[t * cp:(t + 1) * cp, :] = tap_rhs(t, d)
            return jnp.dot(w_ref[...], patch_ref[...],
                           preferred_element_type=jnp.float32)

        # Large C (>= 128): K = C already fills the MXU K dim, so accumulate
        # 9 matmuls directly from shifted slices (no patch materialization,
        # no extra full-activation store traffic).
        acc = jnp.zeros((c, p), jnp.float32)
        for t, d in enumerate(offsets):
            acc = acc + jnp.dot(w_ref[:, t * cp:(t + 1) * cp], tap_rhs(t, d),
                                preferred_element_type=jnp.float32)
        return acc

    x = x_ref[...]

    # ---------------- conv1 (+ folded BN1) + ReLU ---------------------------
    stage(xpad_ref, x)
    y1 = jnp.maximum(conv(xpad_ref, w1_ref) + b1_ref[...], 0.0)     # (C, P) f32

    # ---------------- conv2 (+ folded BN2) + residual + ReLU ----------------
    stage(ypad_ref, y1.astype(cdt))
    y2 = conv(ypad_ref, w2_ref) + b2_ref[...] + x.astype(jnp.float32)
    o_ref[...] = jnp.maximum(y2, 0.0).astype(o_ref.dtype)


def _fold_bn(w_oihw, b, gamma, beta, mean, var, eps, cin_pad):
    """Fold conv bias + eval-mode BatchNorm into (folded weight, folded bias).

    BN(conv(x) + b) = s*conv(x) + (beta + s*(b - mean)),  s = gamma/sqrt(var+eps).
    Weight is returned as (Cout, 9*cin_pad), rows tap-major ((ky,kx) row-major,
    Cin fastest, zero-padded to cin_pad per tap) so one matmul against the
    im2col patch (or a per-tap slice) implements the conv.
    """
    cout, cin = w_oihw.shape[0], w_oihw.shape[1]
    s = gamma / jnp.sqrt(var + eps)
    w_t = jnp.transpose(w_oihw, (0, 2, 3, 1))               # (Cout, 3, 3, Cin)
    if cin_pad != cin:
        w_t = jnp.pad(w_t, ((0, 0), (0, 0), (0, 0), (0, cin_pad - cin)))
    w2d = w_t.reshape(cout, 9 * cin_pad) * s[:, None]
    bias = (beta + s * (b - mean)).reshape(cout, 1).astype(jnp.float32)
    return w2d, bias


def _tap_masks(h, w):
    """(9, h*w) float mask: 1 where the 3x3 tap reads inside the image."""
    ys, xs = np.meshgrid(np.arange(h), np.arange(w), indexing="ij")
    rows = []
    for ky in range(3):
        for kx in range(3):
            dy, dx = ky - 1, kx - 1
            valid = ((ys + dy >= 0) & (ys + dy < h) &
                     (xs + dx >= 0) & (xs + dx < w))
            rows.append(valid.reshape(-1))
    return np.stack(rows).astype(np.float32)


def _vmem_estimate(d, hw, c, cp, halo, use_im2col, c_item, o_item):
    """Rough per-step VMEM working set (bytes) for batch block d."""
    p = d * hw
    b = 2 * (2 * c * 9 * cp + 2 * c) * 4          # dbl-buffered weights + biases
    b += 2 * cp * (p + 2 * halo) * c_item         # xpad + ypad staging
    if use_im2col:
        b += 9 * cp * p * c_item                  # im2col patch
    b += 2 * c * p * c_item                       # dbl-buffered input block
    b += 2 * c * p * o_item                       # dbl-buffered output block
    b += 2 * 9 * p * c_item                       # dbl-buffered tap masks
    return b


def _pick_batch_block(n, hw, c, cp, halo, use_im2col, c_item, o_item,
                      budget_bytes=40 * 1024 * 1024):
    """Largest divisor of n whose working set fits a v7x-safe VMEM budget,
    preferring >= 2 grid steps so both v7x TensorCores get work, and keeping
    the lane block a multiple of 128 (BlockSpec constraint)."""
    divs = [d for d in range(1, n + 1)
            if n % d == 0 and ((d * hw) % 128 == 0 or d == n)]
    fitting = [d for d in divs
               if _vmem_estimate(d, hw, c, cp, halo, use_im2col, c_item,
                                 o_item) <= budget_bytes] or [min(divs)]
    multi_step = [d for d in fitting if n // d >= 2]
    pool = multi_step or fitting
    return max(pool)


def residual_block_pallas(x_nchw, w1, b1, w2, b2,
                          gamma1, beta1, mean1, var1,
                          gamma2, beta2, mean2, var2,
                          *, eps=1e-5, compute_dtype=jnp.float32,
                          out_dtype=jnp.float32, batch_block=None):
    """x_nchw: (N, C, H, W) -> (N, C, H, W).

    compute_dtype=jnp.bfloat16 halves HBM/VMEM traffic and uses the bf16 MXU
    path (v6e/v7x) with f32 accumulation and an f32 epilogue; the default f32
    preserves the PyTorch module's numerics.  out_dtype can likewise be bf16
    when the consumer accepts it (halves output writeback).
    """
    n, c, h, w = x_nchw.shape
    cout = w1.shape[0]
    assert w1.shape == (cout, c, 3, 3) and w2.shape == (cout, cout, 3, 3)
    assert c == cout, "residual add requires in_channels == out_channels"
    hw = h * w
    halo = ((w + 1 + 127) // 128) * 128           # >= W+1, lane-tile aligned

    c_item = jnp.dtype(compute_dtype).itemsize
    o_item = jnp.dtype(out_dtype).itemsize
    sub = 32 // c_item                            # sublane tile: 8 f32 / 16 bf16
    cp = ((c + sub - 1) // sub) * sub             # sublane-aligned per-tap stride

    use_im2col = c < 128                          # direct 9-matmul form at large C

    if batch_block is None:
        batch_block = _pick_batch_block(n, hw, c, cp, halo, use_im2col,
                                        c_item, o_item)
    assert n % batch_block == 0
    assert (batch_block * hw) % 128 == 0 or batch_block == n
    p = batch_block * hw
    grid_len = n // batch_block

    est = _vmem_estimate(batch_block, hw, c, cp, halo, use_im2col, c_item, o_item)
    vmem_limit = int(min(max(32 * 1024 * 1024, 2 * est), 64 * 1024 * 1024))

    w1f, b1f = _fold_bn(w1, b1, gamma1, beta1, mean1, var1, eps, cp)
    w2f, b2f = _fold_bn(w2, b2, gamma2, beta2, mean2, var2, eps, cp)
    w1f = w1f.astype(compute_dtype)
    w2f = w2f.astype(compute_dtype)

    # NCHW -> (C, N*H*W): batch packed onto the lane axis so every in-kernel
    # load/store/matmul is lane-dense even for tiny C.  The transposes are
    # wrapper-side layout plumbing (outside the kernel).
    x_packed = jnp.transpose(x_nchw.reshape(n, c, hw), (1, 0, 2)).reshape(c, n * hw)
    x_packed = x_packed.astype(compute_dtype)

    # Per-image tap masks tiled across the packed batch block; these also kill
    # cross-image tap leakage, so no per-image halo gaps are needed.
    masks = jnp.asarray(np.tile(_tap_masks(h, w), (1, batch_block)),
                        dtype=compute_dtype)

    # Pure-vertical taps (kx==1) only skip the mask when a single image is
    # packed per step (their out-of-image reads then land in the zeroed end
    # halos); with packed batches they must stay masked.
    no_mask_taps = (4,) if batch_block > 1 else (1, 4, 7)

    scratch = [pltpu.VMEM((cp, p + 2 * halo), compute_dtype),    # xpad
               pltpu.VMEM((cp, p + 2 * halo), compute_dtype)]    # ypad
    if use_im2col:
        scratch.append(pltpu.VMEM((9 * cp, p), compute_dtype))   # im2col patch

    kernel = functools.partial(_residual_block_kernel, img_w=w,
                               no_mask_taps=no_mask_taps,
                               use_im2col=use_im2col)

    out_packed = pl.pallas_call(
        kernel,
        out_shape=jax.ShapeDtypeStruct((cout, n * hw), out_dtype),
        grid_spec=pltpu.PrefetchScalarGridSpec(
            num_scalar_prefetch=0,
            grid=(grid_len,),
            in_specs=[
                pl.BlockSpec((c, p), lambda i: (0, i)),
                pl.BlockSpec((cout, 9 * cp), lambda i: (0, 0)),
                pl.BlockSpec((cout, 1), lambda i: (0, 0)),
                pl.BlockSpec((cout, 9 * cp), lambda i: (0, 0)),
                pl.BlockSpec((cout, 1), lambda i: (0, 0)),
                pl.BlockSpec((9, p), lambda i: (0, 0)),
            ],
            out_specs=pl.BlockSpec((cout, p), lambda i: (0, i)),
            scratch_shapes=scratch,
        ),
        compiler_params=pltpu.CompilerParams(
            dimension_semantics=("parallel",),
            vmem_limit_bytes=vmem_limit),
    )(x_packed, w1f, b1f, w2f, b2f, masks)

    out = out_packed.reshape(cout, n, hw).transpose(1, 0, 2)
    return out.reshape(n, cout, h, w)


def _reference_forward(x, w1, b1, w2, b2,
                       gamma1, beta1, mean1, var1,
                       gamma2, beta2, mean2, var2, eps=1e-5):
    """Plain-JAX reference (eval-mode BatchNorm), NCHW / OIHW."""
    dn = ("NCHW", "OIHW", "NCHW")

    def bn(z, g, bta, m, v):
        inv = g / jnp.sqrt(v + eps)
        return ((z - m[None, :, None, None]) * inv[None, :, None, None]
                + bta[None, :, None, None])

    y = lax.conv_general_dilated(x, w1, (1, 1), "SAME", dimension_numbers=dn)
    y = jnp.maximum(bn(y + b1[None, :, None, None],
                       gamma1, beta1, mean1, var1), 0.0)
    z = lax.conv_general_dilated(y, w2, (1, 1), "SAME", dimension_numbers=dn)
    z = bn(z + b2[None, :, None, None], gamma2, beta2, mean2, var2) + x
    return jnp.maximum(z, 0.0)


if __name__ == "__main__":
    N, C, H, W = 8, 4, 16, 16
    eps = 1e-5

    key = jax.random.PRNGKey(0)
    ks = jax.random.split(key, 13)

    x = jax.random.normal(ks[0], (N, C, H, W), dtype=jnp.float32)

    # PyTorch-style uniform init: bound = 1/sqrt(fan_in).
    bound = 1.0 / (C * 9) ** 0.5
    w1 = jax.random.uniform(ks[1], (C, C, 3, 3), jnp.float32, -bound, bound)
    b1 = jax.random.uniform(ks[2], (C,), jnp.float32, -bound, bound)
    w2 = jax.random.uniform(ks[3], (C, C, 3, 3), jnp.float32, -bound, bound)
    b2 = jax.random.uniform(ks[4], (C,), jnp.float32, -bound, bound)

    # Eval-mode BatchNorm parameters / running statistics (non-trivial values
    # so the fold-into-conv path is actually exercised).
    gamma1 = 1.0 + 0.1 * jax.random.normal(ks[5], (C,), jnp.float32)
    beta1 = 0.1 * jax.random.normal(ks[6], (C,), jnp.float32)
    mean1 = 0.1 * jax.random.normal(ks[7], (C,), jnp.float32)
    var1 = jnp.abs(1.0 + 0.1 * jax.random.normal(ks[8], (C,), jnp.float32))
    gamma2 = 1.0 + 0.1 * jax.random.normal(ks[9], (C,), jnp.float32)
    beta2 = 0.1 * jax.random.normal(ks[10], (C,), jnp.float32)
    mean2 = 0.1 * jax.random.normal(ks[11], (C,), jnp.float32)
    var2 = jnp.abs(1.0 + 0.1 * jax.random.normal(ks[12], (C,), jnp.float32))

    run = jax.jit(residual_block_pallas)
    out = jax.block_until_ready(
        run(x, w1, b1, w2, b2,
            gamma1, beta1, mean1, var1,
            gamma2, beta2, mean2, var2))

    ref = _reference_forward(x, w1, b1, w2, b2,
                             gamma1, beta1, mean1, var1,
                             gamma2, beta2, mean2, var2, eps)
    assert out.shape == (N, C, H, W)
    assert jnp.allclose(out, ref, atol=1e-4, rtol=1e-4), "mismatch vs reference"

    print("KERNEL_OK")
</pallas_src>

<mosaic_0001>
module attributes {stable_mosaic.version = 11 : i64} {
  func.func @_residual_block_kernel(%arg0: i32, %arg1: memref<4x1024xf32, #tpu.memory_space<vmem>>, %arg2: memref<4x72xf32, #tpu.memory_space<vmem>>, %arg3: memref<4x1xf32, #tpu.memory_space<vmem>>, %arg4: memref<4x72xf32, #tpu.memory_space<vmem>>, %arg5: memref<4x1xf32, #tpu.memory_space<vmem>>, %arg6: memref<9x1024xf32, #tpu.memory_space<vmem>>, %arg7: memref<4x1024xf32, #tpu.memory_space<vmem>>, %arg8: memref<8x1280xf32, #tpu.memory_space<vmem>>, %arg9: memref<8x1280xf32, #tpu.memory_space<vmem>>, %arg10: memref<72x1024xf32, #tpu.memory_space<vmem>>) attributes {dimension_semantics = [#tpu.dimension_semantics<parallel>], iteration_bounds = array<i64: 2>, scalar_prefetch = 0 : i64, scratch_operands = 3 : i64, tpu.core_type = #tpu.core_type<tc>, window_params = [{transform_indices = @transform_0, window_bounds = array<i64: 4, 1024>}, {pipeline_mode = #tpu.pipeline_mode<synchronous>, transform_indices = @transform_1, window_bounds = array<i64: 4, 72>}, {pipeline_mode = #tpu.pipeline_mode<synchronous>, transform_indices = @transform_2, window_bounds = array<i64: 4, 1>}, {pipeline_mode = #tpu.pipeline_mode<synchronous>, transform_indices = @transform_3, window_bounds = array<i64: 4, 72>}, {pipeline_mode = #tpu.pipeline_mode<synchronous>, transform_indices = @transform_4, window_bounds = array<i64: 4, 1>}, {pipeline_mode = #tpu.pipeline_mode<synchronous>, transform_indices = @transform_5, window_bounds = array<i64: 9, 1024>}, {transform_indices = @transform_6, window_bounds = array<i64: 4, 1024>}]} {
    %cst = arith.constant 0.000000e+00 : f32
    %0 = vector.broadcast %cst : f32 to vector<8x128xf32>
    %c0 = arith.constant 0 : index
    %c0_0 = arith.constant 0 : index
    %1 = vector.load %arg1[%c0, %c0_0] : memref<4x1024xf32, #tpu.memory_space<vmem>>, vector<4x1024xf32>
    %c0_1 = arith.constant 0 : index
    %c0_2 = arith.constant 0 : index
    %2 = vector.load %arg8[%c0_1, %c0_2] : memref<8x1280xf32, #tpu.memory_space<vmem>>, vector<8x128xf32>
    tpu.vector_store %arg8[%c0_1, %c0_2], %0 {strides = array<i32>} : memref<8x1280xf32, #tpu.memory_space<vmem>>, vector<8x128xf32>,
    %c0_3 = arith.constant 0 : index
    %c1152 = arith.constant 1152 : index
    %3 = vector.load %arg8[%c0_3, %c1152] : memref<8x1280xf32, #tpu.memory_space<vmem>>, vector<8x128xf32>
    tpu.vector_store %arg8[%c0_3, %c1152], %0 {strides = array<i32>} : memref<8x1280xf32, #tpu.memory_space<vmem>>, vector<8x128xf32>,
    %cst_4 = arith.constant 0.000000e+00 : f32
    %4 = vector.broadcast %cst_4 : f32 to vector<4x1280xf32>
    %c4 = arith.constant 4 : index
    %c0_5 = arith.constant 0 : index
    %5 = vector.load %arg8[%c4, %c0_5] : memref<8x1280xf32, #tpu.memory_space<vmem>>, vector<4x1280xf32>
    tpu.vector_store %arg8[%c4, %c0_5], %4 {strides = array<i32>} : memref<8x1280xf32, #tpu.memory_space<vmem>>, vector<4x1280xf32>,
    %c0_6 = arith.constant 0 : index
    %c128 = arith.constant 128 : index
    %6 = vector.load %arg8[%c0_6, %c128] : memref<8x1280xf32, #tpu.memory_space<vmem>>, vector<4x1024xf32>
    tpu.vector_store %arg8[%c0_6, %c128], %1 {strides = array<i32>} : memref<8x1280xf32, #tpu.memory_space<vmem>>, vector<4x1024xf32>,
    %c0_7 = arith.constant 0 : index
    %c111 = arith.constant 111 : index
    %7 = vector.load %arg8[%c0_7, %c111] : memref<8x1280xf32, #tpu.memory_space<vmem>>, vector<8x1024xf32>
    %c0_8 = arith.constant 0 : index
    %c0_9 = arith.constant 0 : index
    %8 = vector.load %arg6[%c0_8, %c0_9] : memref<9x1024xf32, #tpu.memory_space<vmem>>, vector<1x1024xf32>
    %9 = vector.broadcast %8 : vector<1x1024xf32> to vector<8x1024xf32>
    %10 = arith.mulf %7, %9 : vector<8x1024xf32>
    %c0_10 = arith.constant 0 : index
    %c0_11 = arith.constant 0 : index
    %11 = vector.load %arg10[%c0_10, %c0_11] : memref<72x1024xf32, #tpu.memory_space<vmem>>, vector<8x1024xf32>
    tpu.vector_store %arg10[%c0_10, %c0_11], %10 {strides = array<i32>} : memref<72x1024xf32, #tpu.memory_space<vmem>>, vector<8x1024xf32>,
    %c0_12 = arith.constant 0 : index
    %c112 = arith.constant 112 : index
    %12 = vector.load %arg8[%c0_12, %c112] : memref<8x1280xf32, #tpu.memory_space<vmem>>, vector<8x1024xf32>
    %c1 = arith.constant 1 : index
    %c0_13 = arith.constant 0 : index
    %13 = vector.load %arg6[%c1, %c0_13] : memref<9x1024xf32, #tpu.memory_space<vmem>>, vector<1x1024xf32>
    %14 = vector.broadcast %13 : vector<1x1024xf32> to vector<8x1024xf32>
    %15 = arith.mulf %12, %14 : vector<8x1024xf32>
    %c8 = arith.constant 8 : index
    %c0_14 = arith.constant 0 : index
    %16 = vector.load %arg10[%c8, %c0_14] : memref<72x1024xf32, #tpu.memory_space<vmem>>, vector<8x1024xf32>
    tpu.vector_store %arg10[%c8, %c0_14], %15 {strides = array<i32>} : memref<72x1024xf32, #tpu.memory_space<vmem>>, vector<8x1024xf32>,
    %c0_15 = arith.constant 0 : index
    %c113 = arith.constant 113 : index
    %17 = vector.load %arg8[%c0_15, %c113] : memref<8x1280xf32, #tpu.memory_space<vmem>>, vector<8x1024xf32>
    %c2 = arith.constant 2 : index
    %c0_16 = arith.constant 0 : index
    %18 = vector.load %arg6[%c2, %c0_16] : memref<9x1024xf32, #tpu.memory_space<vmem>>, vector<1x1024xf32>
    %19 = vector.broadcast %18 : vector<1x1024xf32> to vector<8x1024xf32>
    %20 = arith.mulf %17, %19 : vector<8x1024xf32>
    %c16 = arith.constant 16 : index
    %c0_17 = arith.constant 0 : index
    %21 = vector.load %arg10[%c16, %c0_17] : memref<72x1024xf32, #tpu.memory_space<vmem>>, vector<8x1024xf32>
    tpu.vector_store %arg10[%c16, %c0_17], %20 {strides = array<i32>} : memref<72x1024xf32, #tpu.memory_space<vmem>>, vector<8x1024xf32>,
    %c0_18 = arith.constant 0 : index
    %c127 = arith.constant 127 : index
    %22 = vector.load %arg8[%c0_18, %c127] : memref<8x1280xf32, #tpu.memory_space<vmem>>, vector<8x1024xf32>
    %c3 = arith.constant 3 : index
    %c0_19 = arith.constant 0 : index
    %23 = vector.load %arg6[%c3, %c0_19] : memref<9x1024xf32, #tpu.memory_space<vmem>>, vector<1x1024xf32>
    %24 = vector.broadcast %23 : vector<1x1024xf32> to vector<8x1024xf32>
    %25 = arith.mulf %22, %24 : vector<8x1024xf32>
    %c24 = arith.constant 24 : index
    %c0_20 = arith.constant 0 : index
    %26 = vector.load %arg10[%c24, %c0_20] : memref<72x1024xf32, #tpu.memory_space<vmem>>, vector<8x1024xf32>
    tpu.vector_store %arg10[%c24, %c0_20], %25 {strides = array<i32>} : memref<72x1024xf32, #tpu.memory_space<vmem>>, vector<8x1024xf32>,
    %c0_21 = arith.constant 0 : index
    %c128_22 = arith.constant 128 : index
    %27 = vector.load %arg8[%c0_21, %c128_22] : memref<8x1280xf32, #tpu.memory_space<vmem>>, vector<8x1024xf32>
    %c32 = arith.constant 32 : index
    %c0_23 = arith.constant 0 : index
    %28 = vector.load %arg10[%c32, %c0_23] : memref<72x1024xf32, #tpu.memory_space<vmem>>, vector<8x1024xf32>
    tpu.vector_store %arg10[%c32, %c0_23], %27 {strides = array<i32>} : memref<72x1024xf32, #tpu.memory_space<vmem>>, vector<8x1024xf32>,
    %c0_24 = arith.constant 0 : index
    %c129 = arith.constant 129 : index
    %29 = vector.load %arg8[%c0_24, %c129] : memref<8x1280xf32, #tpu.memory_space<vmem>>, vector<8x1024xf32>
    %c5 = arith.constant 5 : index
    %c0_25 = arith.constant 0 : index
    %30 = vector.load %arg6[%c5, %c0_25] : memref<9x1024xf32, #tpu.memory_space<vmem>>, vector<1x1024xf32>
    %31 = vector.broadcast %30 : vector<1x1024xf32> to vector<8x1024xf32>
    %32 = arith.mulf %29, %31 : vector<8x1024xf32>
    %c40 = arith.constant 40 : index
    %c0_26 = arith.constant 0 : index
    %33 = vector.load %arg10[%c40, %c0_26] : memref<72x1024xf32, #tpu.memory_space<vmem>>, vector<8x1024xf32>
    tpu.vector_store %arg10[%c40, %c0_26], %32 {strides = array<i32>} : memref<72x1024xf32, #tpu.memory_space<vmem>>, vector<8x1024xf32>,
    %c0_27 = arith.constant 0 : index
    %c143 = arith.constant 143 : index
    %34 = vector.load %arg8[%c0_27, %c143] : memref<8x1280xf32, #tpu.memory_space<vmem>>, vector<8x1024xf32>
    %c6 = arith.constant 6 : index
    %c0_28 = arith.constant 0 : index
    %35 = vector.load %arg6[%c6, %c0_28] : memref<9x1024xf32, #tpu.memory_space<vmem>>, vector<1x1024xf32>
    %36 = vector.broadcast %35 : vector<1x1024xf32> to vector<8x1024xf32>
    %37 = arith.mulf %34, %36 : vector<8x1024xf32>
    %c48 = arith.constant 48 : index
    %c0_29 = arith.constant 0 : index
    %38 = vector.load %arg10[%c48, %c0_29] : memref<72x1024xf32, #tpu.memory_space<vmem>>, vector<8x1024xf32>
    tpu.vector_store %arg10[%c48, %c0_29], %37 {strides = array<i32>} : memref<72x1024xf32, #tpu.memory_space<vmem>>, vector<8x1024xf32>,
    %c0_30 = arith.constant 0 : index
    %c144 = arith.constant 144 : index
    %39 = vector.load %arg8[%c0_30, %c144] : memref<8x1280xf32, #tpu.memory_space<vmem>>, vector<8x1024xf32>
    %c7 = arith.constant 7 : index
    %c0_31 = arith.constant 0 : index
    %40 = vector.load %arg6[%c7, %c0_31] : memref<9x1024xf32, #tpu.memory_space<vmem>>, vector<1x1024xf32>
    %41 = vector.broadcast %40 : vector<1x1024xf32> to vector<8x1024xf32>
    %42 = arith.mulf %39, %41 : vector<8x1024xf32>
    %c56 = arith.constant 56 : index
    %c0_32 = arith.constant 0 : index
    %43 = vector.load %arg10[%c56, %c0_32] : memref<72x1024xf32, #tpu.memory_space<vmem>>, vector<8x1024xf32>
    tpu.vector_store %arg10[%c56, %c0_32], %42 {strides = array<i32>} : memref<72x1024xf32, #tpu.memory_space<vmem>>, vector<8x1024xf32>,
    %c0_33 = arith.constant 0 : index
    %c145 = arith.constant 145 : index
    %44 = vector.load %arg8[%c0_33, %c145] : memref<8x1280xf32, #tpu.memory_space<vmem>>, vector<8x1024xf32>
    %c8_34 = arith.constant 8 : index
    %c0_35 = arith.constant 0 : index
    %45 = vector.load %arg6[%c8_34, %c0_35] : memref<9x1024xf32, #tpu.memory_space<vmem>>, vector<1x1024xf32>
    %46 = vector.broadcast %45 : vector<1x1024xf32> to vector<8x1024xf32>
    %47 = arith.mulf %44, %46 : vector<8x1024xf32>
    %c64 = arith.constant 64 : index
    %c0_36 = arith.constant 0 : index
    %48 = vector.load %arg10[%c64, %c0_36] : memref<72x1024xf32, #tpu.memory_space<vmem>>, vector<8x1024xf32>
    tpu.vector_store %arg10[%c64, %c0_36], %47 {strides = array<i32>} : memref<72x1024xf32, #tpu.memory_space<vmem>>, vector<8x1024xf32>,
    %c0_37 = arith.constant 0 : index
    %c0_38 = arith.constant 0 : index
    %49 = vector.load %arg2[%c0_37, %c0_38] : memref<4x72xf32, #tpu.memory_space<vmem>>, vector<4x72xf32>
    %c0_39 = arith.constant 0 : index
    %c0_40 = arith.constant 0 : index
    %50 = vector.load %arg10[%c0_39, %c0_40] : memref<72x1024xf32, #tpu.memory_space<vmem>>, vector<72x1024xf32>
    %cst_41 = arith.constant dense<0.000000e+00> : vector<4x1024xf32>
    %51 = tpu.matmul %49, %50, %cst_41 {dimension_numbers = #tpu.dot_dimension_numbers<[1], [0], [0], [1], [0, 0, 1, 1], [], []>} : vector<4x72xf32>, vector<72x1024xf32>, vector<4x1024xf32> -> vector<4x1024xf32>
    %c0_42 = arith.constant 0 : index
    %c0_43 = arith.constant 0 : index
    %52 = vector.load %arg3[%c0_42, %c0_43] : memref<4x1xf32, #tpu.memory_space<vmem>>, vector<4x1xf32>
    %53 = vector.broadcast %52 : vector<4x1xf32> to vector<4x1024xf32>
    %54 = arith.addf %51, %53 : vector<4x1024xf32>
    %cst_44 = arith.constant 0.000000e+00 : f32
    %55 = vector.broadcast %cst_44 : f32 to vector<4x1024xf32>
    %56 = arith.maximumf %54, %55 : vector<4x1024xf32>
    %c0_45 = arith.constant 0 : index
    %c0_46 = arith.constant 0 : index
    %57 = vector.load %arg9[%c0_45, %c0_46] : memref<8x1280xf32, #tpu.memory_space<vmem>>, vector<8x128xf32>
    tpu.vector_store %arg9[%c0_45, %c0_46], %0 {strides = array<i32>} : memref<8x1280xf32, #tpu.memory_space<vmem>>, vector<8x128xf32>,
    %c0_47 = arith.constant 0 : index
    %c1152_48 = arith.constant 1152 : index
    %58 = vector.load %arg9[%c0_47, %c1152_48] : memref<8x1280xf32, #tpu.memory_space<vmem>>, vector<8x128xf32>
    tpu.vector_store %arg9[%c0_47, %c1152_48], %0 {strides = array<i32>} : memref<8x1280xf32, #tpu.memory_space<vmem>>, vector<8x128xf32>,
    %cst_49 = arith.constant 0.000000e+00 : f32
    %59 = vector.broadcast %cst_49 : f32 to vector<4x1280xf32>
    %c4_50 = arith.constant 4 : index
    %c0_51 = arith.constant 0 : index
    %60 = vector.load %arg9[%c4_50, %c0_51] : memref<8x1280xf32, #tpu.memory_space<vmem>>, vector<4x1280xf32>
    tpu.vector_store %arg9[%c4_50, %c0_51], %59 {strides = array<i32>} : memref<8x1280xf32, #tpu.memory_space<vmem>>, vector<4x1280xf32>,
    %c0_52 = arith.constant 0 : index
    %c128_53 = arith.constant 128 : index
    %61 = vector.load %arg9[%c0_52, %c128_53] : memref<8x1280xf32, #tpu.memory_space<vmem>>, vector<4x1024xf32>
    tpu.vector_store %arg9[%c0_52, %c128_53], %56 {strides = array<i32>} : memref<8x1280xf32, #tpu.memory_space<vmem>>, vector<4x1024xf32>,
    %c0_54 = arith.constant 0 : index
    %c111_55 = arith.constant 111 : index
    %62 = vector.load %arg9[%c0_54, %c111_55] : memref<8x1280xf32, #tpu.memory_space<vmem>>, vector<8x1024xf32>
    %c0_56 = arith.constant 0 : index
    %c0_57 = arith.constant 0 : index
    %63 = vector.load %arg6[%c0_56, %c0_57] : memref<9x1024xf32, #tpu.memory_space<vmem>>, vector<1x1024xf32>
    %64 = vector.broadcast %63 : vector<1x1024xf32> to vector<8x1024xf32>
    %65 = arith.mulf %62, %64 : vector<8x1024xf32>
    %c0_58 = arith.constant 0 : index
    %c0_59 = arith.constant 0 : index
    %66 = vector.load %arg10[%c0_58, %c0_59] : memref<72x1024xf32, #tpu.memory_space<vmem>>, vector<8x1024xf32>
    tpu.vector_store %arg10[%c0_58, %c0_59], %65 {strides = array<i32>} : memref<72x1024xf32, #tpu.memory_space<vmem>>, vector<8x1024xf32>,
    %c0_60 = arith.constant 0 : index
    %c112_61 = arith.constant 112 : index
    %67 = vector.load %arg9[%c0_60, %c112_61] : memref<8x1280xf32, #tpu.memory_space<vmem>>, vector<8x1024xf32>
    %c1_62 = arith.constant 1 : index
    %c0_63 = arith.constant 0 : index
    %68 = vector.load %arg6[%c1_62, %c0_63] : memref<9x1024xf32, #tpu.memory_space<vmem>>, vector<1x1024xf32>
    %69 = vector.broadcast %68 : vector<1x1024xf32> to vector<8x1024xf32>
    %70 = arith.mulf %67, %69 : vector<8x1024xf32>
    %c8_64 = arith.constant 8 : index
    %c0_65 = arith.constant 0 : index
    %71 = vector.load %arg10[%c8_64, %c0_65] : memref<72x1024xf32, #tpu.memory_space<vmem>>, vector<8x1024xf32>
    tpu.vector_store %arg10[%c8_64, %c0_65], %70 {strides = array<i32>} : memref<72x1024xf32, #tpu.memory_space<vmem>>, vector<8x1024xf32>,
    %c0_66 = arith.constant 0 : index
    %c113_67 = arith.constant 113 : index
    %72 = vector.load %arg9[%c0_66, %c113_67] : memref<8x1280xf32, #tpu.memory_space<vmem>>, vector<8x1024xf32>
    %c2_68 = arith.constant 2 : index
    %c0_69 = arith.constant 0 : index
    %73 = vector.load %arg6[%c2_68, %c0_69] : memref<9x1024xf32, #tpu.memory_space<vmem>>, vector<1x1024xf32>
    %74 = vector.broadcast %73 : vector<1x1024xf32> to vector<8x1024xf32>
    %75 = arith.mulf %72, %74 : vector<8x1024xf32>
    %c16_70 = arith.constant 16 : index
    %c0_71 = arith.constant 0 : index
    %76 = vector.load %arg10[%c16_70, %c0_71] : memref<72x1024xf32, #tpu.memory_space<vmem>>, vector<8x1024xf32>
    tpu.vector_store %arg10[%c16_70, %c0_71], %75 {strides = array<i32>} : memref<72x1024xf32, #tpu.memory_space<vmem>>, vector<8x1024xf32>,
    %c0_72 = arith.constant 0 : index
    %c127_73 = arith.constant 127 : index
    %77 = vector.load %arg9[%c0_72, %c127_73] : memref<8x1280xf32, #tpu.memory_space<vmem>>, vector<8x1024xf32>
    %c3_74 = arith.constant 3 : index
    %c0_75 = arith.constant 0 : index
    %78 = vector.load %arg6[%c3_74, %c0_75] : memref<9x1024xf32, #tpu.memory_space<vmem>>, vector<1x1024xf32>
    %79 = vector.broadcast %78 : vector<1x1024xf32> to vector<8x1024xf32>
    %80 = arith.mulf %77, %79 : vector<8x1024xf32>
    %c24_76 = arith.constant 24 : index
    %c0_77 = arith.constant 0 : index
    %81 = vector.load %arg10[%c24_76, %c0_77] : memref<72x1024xf32, #tpu.memory_space<vmem>>, vector<8x1024xf32>
    tpu.vector_store %arg10[%c24_76, %c0_77], %80 {strides = array<i32>} : memref<72x1024xf32, #tpu.memory_space<vmem>>, vector<8x1024xf32>,
    %c0_78 = arith.constant 0 : index
    %c128_79 = arith.constant 128 : index
    %82 = vector.load %arg9[%c0_78, %c128_79] : memref<8x1280xf32, #tpu.memory_space<vmem>>, vector<8x1024xf32>
    %c32_80 = arith.constant 32 : index
    %c0_81 = arith.constant 0 : index
    %83 = vector.load %arg10[%c32_80, %c0_81] : memref<72x1024xf32, #tpu.memory_space<vmem>>, vector<8x1024xf32>
    tpu.vector_store %arg10[%c32_80, %c0_81], %82 {strides = array<i32>} : memref<72x1024xf32, #tpu.memory_space<vmem>>, vector<8x1024xf32>,
    %c0_82 = arith.constant 0 : index
    %c129_83 = arith.constant 129 : index
    %84 = vector.load %arg9[%c0_82, %c129_83] : memref<8x1280xf32, #tpu.memory_space<vmem>>, vector<8x1024xf32>
    %c5_84 = arith.constant 5 : index
    %c0_85 = arith.constant 0 : index
    %85 = vector.load %arg6[%c5_84, %c0_85] : memref<9x1024xf32, #tpu.memory_space<vmem>>, vector<1x1024xf32>
    %86 = vector.broadcast %85 : vector<1x1024xf32> to vector<8x1024xf32>
    %87 = arith.mulf %84, %86 : vector<8x1024xf32>
    %c40_86 = arith.constant 40 : index
    %c0_87 = arith.constant 0 : index
    %88 = vector.load %arg10[%c40_86, %c0_87] : memref<72x1024xf32, #tpu.memory_space<vmem>>, vector<8x1024xf32>
    tpu.vector_store %arg10[%c40_86, %c0_87], %87 {strides = array<i32>} : memref<72x1024xf32, #tpu.memory_space<vmem>>, vector<8x1024xf32>,
    %c0_88 = arith.constant 0 : index
    %c143_89 = arith.constant 143 : index
    %89 = vector.load %arg9[%c0_88, %c143_89] : memref<8x1280xf32, #tpu.memory_space<vmem>>, vector<8x1024xf32>
    %c6_90 = arith.constant 6 : index
    %c0_91 = arith.constant 0 : index
    %90 = vector.load %arg6[%c6_90, %c0_91] : memref<9x1024xf32, #tpu.memory_space<vmem>>, vector<1x1024xf32>
    %91 = vector.broadcast %90 : vector<1x1024xf32> to vector<8x1024xf32>
    %92 = arith.mulf %89, %91 : vector<8x1024xf32>
    %c48_92 = arith.constant 48 : index
    %c0_93 = arith.constant 0 : index
    %93 = vector.load %arg10[%c48_92, %c0_93] : memref<72x1024xf32, #tpu.memory_space<vmem>>, vector<8x1024xf32>
    tpu.vector_store %arg10[%c48_92, %c0_93], %92 {strides = array<i32>} : memref<72x1024xf32, #tpu.memory_space<vmem>>, vector<8x1024xf32>,
    %c0_94 = arith.constant 0 : index
    %c144_95 = arith.constant 144 : index
    %94 = vector.load %arg9[%c0_94, %c144_95] : memref<8x1280xf32, #tpu.memory_space<vmem>>, vector<8x1024xf32>
    %c7_96 = arith.constant 7 : index
    %c0_97 = arith.constant 0 : index
    %95 = vector.load %arg6[%c7_96, %c0_97] : memref<9x1024xf32, #tpu.memory_space<vmem>>, vector<1x1024xf32>
    %96 = vector.broadcast %95 : vector<1x1024xf32> to vector<8x1024xf32>
    %97 = arith.mulf %94, %96 : vector<8x1024xf32>
    %c56_98 = arith.constant 56 : index
    %c0_99 = arith.constant 0 : index
    %98 = vector.load %arg10[%c56_98, %c0_99] : memref<72x1024xf32, #tpu.memory_space<vmem>>, vector<8x1024xf32>
    tpu.vector_store %arg10[%c56_98, %c0_99], %97 {strides = array<i32>} : memref<72x1024xf32, #tpu.memory_space<vmem>>, vector<8x1024xf32>,
    %c0_100 = arith.constant 0 : index
    %c145_101 = arith.constant 145 : index
    %99 = vector.load %arg9[%c0_100, %c145_101] : memref<8x1280xf32, #tpu.memory_space<vmem>>, vector<8x1024xf32>
    %c8_102 = arith.constant 8 : index
    %c0_103 = arith.constant 0 : index
    %100 = vector.load %arg6[%c8_102, %c0_103] : memref<9x1024xf32, #tpu.memory_space<vmem>>, vector<1x1024xf32>
    %101 = vector.broadcast %100 : vector<1x1024xf32> to vector<8x1024xf32>
    %102 = arith.mulf %99, %101 : vector<8x1024xf32>
    %c64_104 = arith.constant 64 : index
    %c0_105 = arith.constant 0 : index
    %103 = vector.load %arg10[%c64_104, %c0_105] : memref<72x1024xf32, #tpu.memory_space<vmem>>, vector<8x1024xf32>
    tpu.vector_store %arg10[%c64_104, %c0_105], %102 {strides = array<i32>} : memref<72x1024xf32, #tpu.memory_space<vmem>>, vector<8x1024xf32>,
    %c0_106 = arith.constant 0 : index
    %c0_107 = arith.constant 0 : index
    %104 = vector.load %arg4[%c0_106, %c0_107] : memref<4x72xf32, #tpu.memory_space<vmem>>, vector<4x72xf32>
    %c0_108 = arith.constant 0 : index
    %c0_109 = arith.constant 0 : index
    %105 = vector.load %arg10[%c0_108, %c0_109] : memref<72x1024xf32, #tpu.memory_space<vmem>>, vector<72x1024xf32>
    %cst_110 = arith.constant dense<0.000000e+00> : vector<4x1024xf32>
    %106 = tpu.matmul %104, %105, %cst_110 {dimension_numbers = #tpu.dot_dimension_numbers<[1], [0], [0], [1], [0, 0, 1, 1], [], []>} : vector<4x72xf32>, vector<72x1024xf32>, vector<4x1024xf32> -> vector<4x1024xf32>
    %c0_111 = arith.constant 0 : index
    %c0_112 = arith.constant 0 : index
    %107 = vector.load %arg5[%c0_111, %c0_112] : memref<4x1xf32, #tpu.memory_space<vmem>>, vector<4x1xf32>
    %108 = vector.broadcast %107 : vector<4x1xf32> to vector<4x1024xf32>
    %109 = arith.addf %106, %108 : vector<4x1024xf32>
    %110 = arith.addf %109, %1 : vector<4x1024xf32>
    %cst_113 = arith.constant 0.000000e+00 : f32
    %111 = vector.broadcast %cst_113 : f32 to vector<4x1024xf32>
    %112 = arith.maximumf %110, %111 : vector<4x1024xf32>
    %c0_114 = arith.constant 0 : index
    %c0_115 = arith.constant 0 : index
    %113 = vector.load %arg7[%c0_114, %c0_115] : memref<4x1024xf32, #tpu.memory_space<vmem>>, vector<4x1024xf32>
    tpu.vector_store %arg7[%c0_114, %c0_115], %112 {strides = array<i32>} : memref<4x1024xf32, #tpu.memory_space<vmem>>, vector<4x1024xf32>,
    return
  }
  func.func @transform_0(%arg0: i32) -> (i32, i32) {
    %c0_i32 = arith.constant 0 : i32
    %c0_i32_0 = arith.constant 0 : i32
    return %c0_i32, %arg0 : i32, i32
  }
  func.func @transform_1(%arg0: i32) -> (i32, i32) {
    %c0_i32 = arith.constant 0 : i32
    %c0_i32_0 = arith.constant 0 : i32
    %c0_i32_1 = arith.constant 0 : i32
    return %c0_i32, %c0_i32_0 : i32, i32
  }
  func.func @transform_2(%arg0: i32) -> (i32, i32) {
    %c0_i32 = arith.constant 0 : i32
    %c0_i32_0 = arith.constant 0 : i32
    %c0_i32_1 = arith.constant 0 : i32
    return %c0_i32, %c0_i32_0 : i32, i32
  }
  func.func @transform_3(%arg0: i32) -> (i32, i32) {
    %c0_i32 = arith.constant 0 : i32
    %c0_i32_0 = arith.constant 0 : i32
    %c0_i32_1 = arith.constant 0 : i32
    return %c0_i32, %c0_i32_0 : i32, i32
  }
  func.func @transform_4(%arg0: i32) -> (i32, i32) {
    %c0_i32 = arith.constant 0 : i32
    %c0_i32_0 = arith.constant 0 : i32
    %c0_i32_1 = arith.constant 0 : i32
    return %c0_i32, %c0_i32_0 : i32, i32
  }
  func.func @transform_5(%arg0: i32) -> (i32, i32) {
    %c0_i32 = arith.constant 0 : i32
    %c0_i32_0 = arith.constant 0 : i32
    %c0_i32_1 = arith.constant 0 : i32
    return %c0_i32, %c0_i32_0 : i32, i32
  }
  func.func @transform_6(%arg0: i32) -> (i32, i32) {
    %c0_i32 = arith.constant 0 : i32
    %c0_i32_0 = arith.constant 0 : i32
    return %c0_i32, %arg0 : i32, i32
  }
}

</mosaic_0001>

<bundles_post_ra>
// kernel: residual_block_pallas.1
= control target key start
LH: loop header
LB: loop body
LE: loop exit
PB: predicated region body
PF: predicated region fallthrough
CT: control target
= control target key end

     0   :  { %s3914_s21 = smov 0   ;;  %s5807_s0 = inlined_call_operand.vmem [shape: f32[4,2048], index: 0, kind: input, shape index: {}]   ;;  %s5808_s1 = inlined_call_operand.vmem [shape: f32[4,72], index: 1, kind: input, shape index: {}]   ;;  %s5809_s2 = inlined_call_operand.vmem [shape: f32[4,1], index: 2, kind: input, shape index: {}]   ;;  %s5810_s3 = inlined_call_operand.vmem [shape: f32[4,72], index: 3, kind: input, shape index: {}]   ;;  %s5811_s4 = inlined_call_operand.vmem [shape: f32[4,1], index: 4, kind: input, shape index: {}]   ;;  %s5812_s5 = inlined_call_operand.vmem [shape: f32[9,1024], index: 5, kind: input, shape index: {}]   ;;  %s5813_s6 = inlined_call_operand.vmem [shape: f32[4,2048], index: 6, kind: output, shape index: {}]  }
   0x1 LB: > { %s3383_s22 = sadd.s32 4294967295, %s3867_s21   ;;  %p3387_p0 = scmp.ge.s32.totalorder %s3867_s21, 1  ;;  %s3867_s21 = sphi %s3914_s21, %s16_s21  }
   0x2   : > { %p213_p1 = scmp.lt.s32.totalorder %s3867_s21, 3 }
   0x4   : > { %p214_p2 = pnand %p3387_p0, %p213_p1 }
   0x6   : > { %217 = sbr.rel (%p214_p2) target bundleno = 1030 (0x406), region = 44 }
   0xd   : > { %v300_v0 = vld [vmem:[%s5812_s5] ss:$8 sm:$0xf]  ;;  %v304_v2 = vlaneseq  ;;  %v3392_v3 = vld [vmem:[%s5812_s5 + $0x1] ss:$8 sm:$0xf] }
   0xe   : > { %v301_v1 = vld [vmem:[%s5812_s5] ss:$8 sm:$0xf0]  ;;  %v3393_v6 = vld [vmem:[%s5812_s5 + $0x1] ss:$8 sm:$0xf0] }
   0xf   : > { %v3931_v4 = vor.u32 %v301_v1, %v300_v0  ;;  %v3933_v5 = vshrl.u32 %v304_v2, 7  ;;  %v5815_v7 = vmov 0.0   ;;  %v3970_v10 = vor.u32 %v3393_v6, %v3392_v3  ;;  %s3870_s7 = smov 111   ;;  %v3394_v16 = vld [vmem:[%s5812_s5 + $0x2] ss:$8 sm:$0xf] }
  0x10   : > { %259 = vst [vmem:[#allocation2] sm:$0xff] %v5815_v7  ;;  %260 = vst [vmem:[#allocation2 + $0x48] sm:$0xff] %v5815_v7  ;;  %1565 = vmatprep.mubr.f32.mxu0 %v5815_v7  ;;  %1636 = vmatprep.mubr.f32.mxu1 %v5815_v7  ;;  %v3395_v17 = vld [vmem:[%s5812_s5 + $0x2] ss:$8 sm:$0xf0]  ;;  %s3388_s12 = sshll.u32 %s3383_s22, 3 }
  0x11   : > { %262 = vst [vmem:[#allocation2 + $0x8] sm:$0xf0] %v5815_v7  ;;  %263 = vst [vmem:[#allocation2 + $0x10] sm:$0xf0] %v5815_v7  ;;  %v3965_v8 = vsub.s32 2, %v3933_v5  ;;  %v3968_v9 = vsub.s32 0, %v3933_v5  ;;  %v3999_v20 = vor.u32 %v3395_v17, %v3394_v16 }
  0x12   : > { %264 = vst [vmem:[#allocation2 + $0x18] sm:$0xf0] %v5815_v7  ;;  %265 = vst [vmem:[#allocation2 + $0x20] sm:$0xf0] %v5815_v7  ;;  %v3973_v11 = vsub.s32 1, %v3933_v5  ;;  %p244_p3 = scmp.lt.s32.totalorder %s3388_s12, 15 }
  0x13   : > { %266 = vst [vmem:[#allocation2 + $0x28] sm:$0xf0] %v5815_v7  ;;  %267 = vst [vmem:[#allocation2 + $0x30] sm:$0xf0] %v5815_v7  ;;  %v315_v12 = vrot.slane %v3931_v4, %v3965_v8  ;;  %v307_v13 = vrot.slane %v3931_v4, %v3968_v9  ;;  %v447_v14 = vrot.slane %v3970_v10, %v3968_v9  ;;  %s3871_s13 = smov 112   ;;  %s3872_s23 = smov 113  }
  0x14   : > { %268 = vst [vmem:[#allocation2 + $0x38] sm:$0xf0] %v5815_v7  ;;  %269 = vst [vmem:[#allocation2 + $0x40] sm:$0xf0] %v5815_v7  ;;  %v311_v15 = vrot.slane %v3931_v4, %v3973_v11  ;;  %v455_v18 = vrot.slane %v3970_v10, %v3965_v8  ;;  %v451_v19 = vrot.slane %v3970_v10, %v3973_v11  ;;  %s5888_s12 = smov (!%p244_p3, %s3388_s12), 15  ;;  %s3873_s28 = smov 127  }
  0x15   : > { %1793 = vst [vmem:[#allocation3] sm:$0xff] %v5815_v7  ;;  %1794 = vst [vmem:[#allocation3 + $0x48] sm:$0xff] %v5815_v7  ;;  %340 = vrot.lane.b32.xlu1 %v315_v12, %s3870_s7  ;;  %336 = vrot.lane.b32.xlu0 %v307_v13, %s3870_s7  ;;  %v3396_v21 = vld [vmem:[%s5812_s5 + $0x3] ss:$8 sm:$0xf]  ;;  %s3389_s18 = sshll.u32 %s5888_s12, 2  ;;  %v591_v23 = vrot.slane %v3999_v20, %v3973_v11  ;;  %v587_v24 = vrot.slane %v3999_v20, %v3968_v9 }
  0x16   : > { %1796 = vst [vmem:[#allocation3 + $0x8] sm:$0xf0] %v5815_v7  ;;  %1797 = vst [vmem:[#allocation3 + $0x10] sm:$0xf0] %v5815_v7  ;;  %s4023_s22 = scalar_lea.vmem %s5807_s0, %s3389_s18  ;;  %v595_v29 = vrot.slane %v3999_v20, %v3965_v8  ;;  %v4070_v39 = vsub.s32 3, %v3933_v5  ;;  %s3874_s29 = smov 1  }
  0x17   : > { %1798 = vst [vmem:[#allocation3 + $0x18] sm:$0xf0] %v5815_v7  ;;  %1799 = vst [vmem:[#allocation3 + $0x20] sm:$0xf0] %v5815_v7  ;;  %v4026_v26 = vld [vmem:[%s4023_s22] sm:$0xff]  ;;  %v4029_v27 = vld [vmem:[%s4023_s22 + $0x8] sm:$0xff] }
  0x18   : > { %1800 = vst [vmem:[#allocation3 + $0x28] sm:$0xf0] %v5815_v7  ;;  %1801 = vst [vmem:[#allocation3 + $0x30] sm:$0xf0] %v5815_v7  ;;  %v4047_v32 = vcombine.high %v4026_v26, %v4026_v26  ;;  %v4060_v36 = vcombine.high %v4029_v27, %v4029_v27  ;;  %v319_v40 = vrot.slane %v3931_v4, %v4070_v39  ;;  %v4079_v42 = vsub.s32 4, %v3933_v5  ;;  %s3875_s17 = smov 15  }
  0x19   : > { %1802 = vst [vmem:[#allocation3 + $0x38] sm:$0xf0] %v5815_v7  ;;  %1803 = vst [vmem:[#allocation3 + $0x40] sm:$0xf0] %v5815_v7  ;;  %476 = vrot.lane.b32.xlu1 %v447_v14, %s3871_s13  ;;  %338 = vrot.lane.b32.xlu0 %v311_v15, %s3870_s7  ;;  %v459_v45 = vrot.slane %v3970_v10, %v4070_v39  ;;  %v4116_v55 = vld [vmem:[%s4023_s22 + $0x10] sm:$0xff]  ;;  %s3876_s19 = smov 16   ;;  %v599_v59 = vrot.slane %v3999_v20, %v4070_v39 }
  0x1a   : > { %261 = vst [vmem:[#allocation2] sm:$0xf0] %v5815_v7  ;;  %270 = vst [vmem:[#allocation2 + $0x48] sm:$0xf0] %v5815_v7  ;;  %v323_v46 = vrot.slane %v3931_v4, %v4079_v42  ;;  %v463_v49 = vrot.slane %v3970_v10, %v4079_v42  ;;  %v4127_v58 = vcombine.high %v4116_v55, %v4116_v55  ;;  %v4149_v1 = vsub.s32 5, %v3933_v5  ;;  %s3877_s27 = smov 17  }
  0x1b   : > { %1795 = vst [vmem:[#allocation3] sm:$0xf0] %v5815_v7  ;;  %1804 = vst [vmem:[#allocation3 + $0x48] sm:$0xf0] %v5815_v7  ;;  %v603_v62 = vrot.slane %v3999_v20, %v4079_v42  ;;  %v4158_v6 = vsub.s32 6, %v3933_v5  ;;  %vm352_vm0 = vcmask 908288  }
  0x1c   : > { %v3397_v22 = vld [vmem:[%s5812_s5 + $0x3] ss:$8 sm:$0xf0]  ;;  %5839 = vst [vmem:[#allocation5_spill] sm:$0xff] %v4026_v26  ;;  %5840 = vst [vmem:[#allocation6_spill] sm:$0xff] %v4029_v27  ;;  %v327_v2 = vrot.slane %v3931_v4, %v4149_v1  ;;  %v467_v14 = vrot.slane %v3970_v10, %v4149_v1  ;;  %vm492_vm1 = vcmask 916480  }
  0x1d   : > { %480 = vrot.lane.b32.xlu1 %v455_v18, %s3871_s13  ;;  %478 = vrot.lane.b32.xlu0 %v451_v19, %s3871_s13  ;;  %v4016_v25 = vor.u32 %v3397_v22, %v3396_v21  ;;  %283 = vst [vmem:[#allocation2 + $0x8] sm:$0xf] %v4026_v26  ;;  %285 = vst [vmem:[#allocation2 + $0x18] sm:$0xf] %v4029_v27  ;;  %v331_v15 = vrot.slane %v3931_v4, %v4158_v6  ;;  %v4187_v22 = vld [vmem:[%s4023_s22 + $0x18] sm:$0xff]  ;;  %vm632_vm2 = vcmask 924672  }
  0x1e   : > { %v3398_v30 = vld [vmem:[%s5812_s5 + $0x5] ss:$8 sm:$0xf]  ;;  %5841 = vst [vmem:[#allocation7_spill] sm:$0xff] %v4047_v32  ;;  %284 = vst [vmem:[#allocation2 + $0x10] sm:$0xf] %v4047_v32  ;;  %v471_v18 = vrot.slane %v3970_v10, %v4158_v6 }
  0x1f   : > { %v727_v28 = vrot.slane %v4016_v25, %v3968_v9  ;;  %v3399_v31 = vld [vmem:[%s5812_s5 + $0x5] ss:$8 sm:$0xf0]  ;;  %v735_v33 = vrot.slane %v4016_v25, %v3965_v8  ;;  %v731_v34 = vrot.slane %v4016_v25, %v3973_v11  ;;  %5842 = vst [vmem:[#allocation8_spill] sm:$0xff] %v4060_v36  ;;  %286 = vst [vmem:[#allocation2 + $0x20] sm:$0xf] %v4060_v36 }
  0x20   : > { %v4055_v35 = vor.u32 %v3399_v31, %v3398_v30  ;;  %v3400_v43 = vld [vmem:[%s5812_s5 + $0x6] ss:$8 sm:$0xf]  ;;  %v3402_v50 = vld [vmem:[%s5812_s5 + $0x7] ss:$8 sm:$0xf]  ;;  %v739_v61 = vrot.slane %v4016_v25, %v4070_v39  ;;  %v743_v0 = vrot.slane %v4016_v25, %v4079_v42  ;;  %v611_v31 = vrot.slane %v3999_v20, %v4158_v6 }
  0x21   : > { %618 = vrot.lane.b32.xlu1 %v591_v23, %s3872_s23  ;;  %616 = vrot.lane.b32.xlu0 %v587_v24, %s3872_s23  ;;  %v3401_v44 = vld [vmem:[%s5812_s5 + $0x6] ss:$8 sm:$0xf0]  ;;  %v3403_v51 = vld [vmem:[%s5812_s5 + $0x7] ss:$8 sm:$0xf0] }
  0x22   : > { %v887_v37 = vrot.slane %v4055_v35, %v3973_v11  ;;  %v883_v38 = vrot.slane %v4055_v35, %v3968_v9  ;;  %v891_v41 = vrot.slane %v4055_v35, %v3965_v8  ;;  %v4093_v47 = vor.u32 %v3401_v44, %v3400_v43  ;;  %5843 = vst [vmem:[#allocation9_spill] sm:$0xff] %v4116_v55  ;;  %v3404_v12 = vld [vmem:[%s5812_s5 + $0x40] ss:$8 sm:$0xf] }
  0x23   : > { %v4113_v54 = vor.u32 %v3403_v51, %v3402_v50  ;;  %287 = vst [vmem:[#allocation2 + $0x28] sm:$0xf] %v4116_v55  ;;  %5844 = vst [vmem:[#allocation10_spill] sm:$0xff] %v4127_v58  ;;  %v895_v63 = vrot.slane %v4055_v35, %v4070_v39  ;;  %v899_v3 = vrot.slane %v4055_v35, %v4079_v42  ;;  %v3405_v13 = vld [vmem:[%s5812_s5 + $0x40] ss:$8 sm:$0xf0] }
  0x24   : > { %v1021_v48 = vrot.slane %v4093_v47, %v3968_v9  ;;  %v1029_v52 = vrot.slane %v4093_v47, %v3965_v8  ;;  %v1025_v53 = vrot.slane %v4093_v47, %v3973_v11  ;;  %288 = vst [vmem:[#allocation2 + $0x30] sm:$0xf] %v4127_v58  ;;  %v4172_v16 = vor.u32 %v3405_v13, %v3404_v12  ;;  %v5265_v58 = vld [vmem:[#allocation3 + $0x48] sm:$0xff] }
  0x25   : > { %756 = vrot.lane.b32.xlu1 %v727_v28, %s3873_s28  ;;  %620 = vrot.lane.b32.xlu0 %v595_v29, %s3872_s23  ;;  %v1163_v56 = vrot.slane %v4113_v54, %v3973_v11  ;;  %v1159_v57 = vrot.slane %v4113_v54, %v3968_v9  ;;  %v1167_v60 = vrot.slane %v4113_v54, %v3965_v8  ;;  %vm772_vm3 = vcmask 1039360  }
  0x26   : > { %v1297_v17 = vrot.slane %v4172_v16, %v3968_v9  ;;  %v1305_v19 = vrot.slane %v4172_v16, %v3965_v8  ;;  %v1301_v21 = vrot.slane %v4172_v16, %v3973_v11  ;;  %5845 = vst [vmem:[#allocation11_spill] sm:$0xff] %v4187_v22  ;;  %v1037_v23 = vrot.slane %v4093_v47, %v4079_v42 }
  0x27   : > { %v1033_v24 = vrot.slane %v4093_v47, %v4070_v39  ;;  %289 = vst [vmem:[#allocation2 + $0x38] sm:$0xf] %v4187_v22  ;;  %v4198_v28 = vcombine.high %v4187_v22, %v4187_v22  ;;  %v1175_v29 = vrot.slane %v4113_v54, %v4079_v42  ;;  %v1171_v30 = vrot.slane %v4113_v54, %v4070_v39 }
  0x28   : > { %v1317_v51 = vrot.slane %v4172_v16, %v4149_v1  ;;  %vm825_vm4 = vcmask 7168   ;;  %vm685_vm5 = vcmask 121856   ;;  %vm545_vm6 = vcmask 130048   ;;  %5859 = vst [vmem:[#allocation24_spill] sm:$0xff] %v5265_v58 }
  0x29   : > { %760 = vrot.lane.b32.xlu1 %v735_v33, %s3873_s28  ;;  %758 = vrot.lane.b32.xlu0 %v731_v34, %s3873_s28  ;;  %5846 = vst [vmem:[#allocation12_spill] sm:$0xff] %v4198_v28  ;;  %290 = vst [vmem:[#allocation2 + $0x40] sm:$0xf] %v4198_v28  ;;  %v607_v33 = vrot.slane %v3999_v20, %v4149_v1  ;;  %v751_v34 = vrot.slane %v4016_v25, %v4158_v6  ;;  %vm405_vm7 = vcmask 138240   ;;  %vm1497_vm8 = vcmask 588800  }
  0x2d   : > { %914 = vrot.lane.b32.xlu1 %v887_v37, %s3874_s29  ;;  %912 = vrot.lane.b32.xlu0 %v883_v38, %s3874_s29  ;;  %v747_v37 = vrot.slane %v4016_v25, %v4149_v1  ;;  %v907_v38 = vrot.slane %v4055_v35, %v4158_v6 }
  0x31   : > { %342 = vrot.lane.b32.xlu1 %v319_v40, %s3870_s7  ;;  %916 = vrot.lane.b32.xlu0 %v891_v41, %s3874_s29  ;;  %v903_v40 = vrot.slane %v4055_v35, %v4149_v1  ;;  %v4226_v41 = vsub.s32 7, %v3933_v5  ;;  %v1309_v5 = vrot.slane %v4172_v16, %v4070_v39 }
  0x33   : > { %v475_v43 = vrot.slane %v3970_v10, %v4226_v41  ;;  %v335_v44 = vrot.slane %v3931_v4, %v4226_v41  ;;  %v1045_v10 = vrot.slane %v4093_v47, %v4158_v6  ;;  %v1041_v4 = vrot.slane %v4093_v47, %v4149_v1 }
  0x34   : > { %v615_v50 = vrot.slane %v3999_v20, %v4226_v41  ;;  %v1049_v20 = vrot.slane %v4093_v47, %v4226_v41  ;;  %v1325_v47 = vrot.slane %v4172_v16, %v4226_v41 }
  0x35   : > { %482 = vrot.lane.b32.xlu1 %v459_v45, %s3871_s13  ;;  %344 = vrot.lane.b32.xlu0 %v323_v46, %s3870_s7  ;;  %v1313_v45 = vrot.slane %v4172_v16, %v4079_v42  ;;  %v1183_v46 = vrot.slane %v4113_v54, %v4158_v6 }
  0x39   : > { %1050 = vrot.lane.b32.xlu1 %v1021_v48, %s3875_s17  ;;  %484 = vrot.lane.b32.xlu0 %v463_v49, %s3871_s13  ;;  %v1179_v48 = vrot.slane %v4113_v54, %v4149_v1  ;;  %v755_v49 = vrot.slane %v4016_v25, %v4226_v41  ;;  %v1321_v25 = vrot.slane %v4172_v16, %v4158_v6 }
  0x3d   : > { %1054 = vrot.lane.b32.xlu1 %v1029_v52, %s3875_s17  ;;  %1052 = vrot.lane.b32.xlu0 %v1025_v53, %s3875_s17  ;;  %v911_v52 = vrot.slane %v4055_v35, %v4226_v41 }
  0x41   : > { %1190 = vrot.lane.b32.xlu1 %v1163_v56, %s3876_s19  ;;  %1188 = vrot.lane.b32.xlu0 %v1159_v57, %s3876_s19 }
  0x45   : > { %622 = vrot.lane.b32.xlu1 %v599_v59, %s3872_s23  ;;  %1192 = vrot.lane.b32.xlu0 %v1167_v60, %s3876_s19  ;;  %v4270_v60 = vld [vmem:[#allocation2 + $0x8] sm:$0xff] }
  0x49   : > { %762 = vrot.lane.b32.xlu1 %v739_v61, %s3873_s28  ;;  %624 = vrot.lane.b32.xlu0 %v603_v62, %s3872_s23  ;;  %v4272_v61 = vld [vmem:[#allocation2 + $0x10] sm:$0xff] }
  0x4d   : > { %918 = vrot.lane.b32.xlu1 %v895_v63, %s3874_s29  ;;  %764 = vrot.lane.b32.xlu0 %v743_v0, %s3873_s28  ;;  %v1187_v63 = vrot.slane %v4113_v54, %v4226_v41 }
  0x51   : > { %346 = vrot.lane.b32.xlu1 %v327_v2, %s3870_s7  ;;  %920 = vrot.lane.b32.xlu0 %v899_v3, %s3874_s29 }
  0x55   : > { %486 = vrot.lane.b32.xlu1 %v467_v14, %s3871_s13  ;;  %348 = vrot.lane.b32.xlu0 %v331_v15, %s3870_s7 }
  0x59   : > { %1326 = vrot.lane.b32.xlu1 %v1297_v17, %s3877_s27  ;;  %488 = vrot.lane.b32.xlu0 %v471_v18, %s3871_s13 }
  0x5d   : > { %1330 = vrot.lane.b32.xlu1 %v1305_v19, %s3877_s27  ;;  %1328 = vrot.lane.b32.xlu0 %v1301_v21, %s3877_s27 }
  0x61   : > { %1058 = vrot.lane.b32.xlu1 %v1037_v23, %s3875_s17  ;;  %1056 = vrot.lane.b32.xlu0 %v1033_v24, %s3875_s17 }
  0x65   : > { %1196 = vrot.lane.b32.xlu1 %v1175_v29, %s3876_s19  ;;  %1194 = vrot.lane.b32.xlu0 %v1171_v30, %s3876_s19 }
  0x69   : > { %628 = vrot.lane.b32.xlu1 %v611_v31, %s3872_s23  ;;  %626 = vrot.lane.b32.xlu0 %v607_v33, %s3872_s23  ;;  %v291_v33 = vld [vmem:[#allocation2] sm:$0xff] }
  0x6d   : > { %768 = vrot.lane.b32.xlu1 %v751_v34, %s3873_s28  ;;  %766 = vrot.lane.b32.xlu0 %v747_v37, %s3873_s28  ;;  %v4294_v34 = vld [vmem:[#allocation2 + $0x18] sm:$0xff] }
  0x71   : > { %924 = vrot.lane.b32.xlu1 %v907_v38, %s3874_s29  ;;  %922 = vrot.lane.b32.xlu0 %v903_v40, %s3874_s29 }
  0x75   : > { %490 = vrot.lane.b32.xlu1 %v475_v43, %s3871_s13  ;;  %350 = vrot.lane.b32.xlu0 %v335_v44, %s3870_s7 }
  0x79   : > { %1334 = vrot.lane.b32.xlu1 %v1313_v45, %s3877_s27  ;;  %1332 = vrot.lane.b32.xlu0 %v1309_v5, %s3877_s27 }
  0x7d   : > { %1062 = vrot.lane.b32.xlu1 %v1045_v10, %s3875_s17  ;;  %1060 = vrot.lane.b32.xlu0 %v1041_v4, %s3875_s17 }
  0x81   : > { %1200 = vrot.lane.b32.xlu1 %v1183_v46, %s3876_s19  ;;  %1198 = vrot.lane.b32.xlu0 %v1179_v48, %s3876_s19 }
  0x85   : > { %770 = vrot.lane.b32.xlu1 %v755_v49, %s3873_s28  ;;  %630 = vrot.lane.b32.xlu0 %v615_v50, %s3872_s23 }
  0x87   : > { %v341_v53 = vpop.permute.xlu1 %340  ;;  %v337_v56 = vpop.permute.xlu0 %336 }
  0x88   : > { %v369_v44 = vmul.f32 %v337_v56, %v291_v33 }
  0x89   : > { %1336 = vrot.lane.b32.xlu1 %v1317_v51, %s3877_s27  ;;  %926 = vrot.lane.b32.xlu0 %v911_v52, %s3874_s29 }
  0x8b   : > { %v477_v57 = vpop.permute.xlu1 %476  ;;  %v339_v59 = vpop.permute.xlu0 %338 }
  0x8c   : > { %v353_v35 = vsel %vm352_vm0, %v337_v56, %v339_v59  ;;  %v354_v62 = vsel %vm352_vm0, %v339_v59, %v341_v53  ;;  %v509_v52 = vmul.f32 %v477_v57, %v291_v33 }
  0x8d   : > { %1064 = vrot.lane.b32.xlu1 %v1049_v20, %s3875_s17  ;;  %1338 = vrot.lane.b32.xlu0 %v1321_v25, %s3877_s27  ;;  %v370_v0 = vmul.f32 %v353_v35, %v4270_v60  ;;  %v371_v2 = vmul.f32 %v354_v62, %v4272_v61  ;;  %v3878_v20 = vmov 0  }
  0x8e   : > { %3716 = vset.pattern.permute.xlu0 %v3878_v20 }
  0x8f   : > { %v481_v3 = vpop.permute.xlu1 %480  ;;  %v479_v12 = vpop.permute.xlu0 %478  ;;  %v3576_v19 = vpack.i.bf16 %v371_v2, %v370_v0 }
  0x90   : > { %v493_v13 = vsel %vm492_vm1, %v477_v57, %v479_v12  ;;  %v494_v14 = vsel %vm492_vm1, %v479_v12, %v481_v3 }
  0x91   : > { %v510_v15 = vmul.f32 %v493_v13, %v4270_v60  ;;  %v511_v17 = vmul.f32 %v494_v14, %v4272_v61  ;;  %1340 = vrot.lane.b32.xlu1 %v1325_v47, %s3877_s27  ;;  %1202 = vrot.lane.b32.xlu0 %v1187_v63, %s3876_s19 }
  0x93   : > { %v619_v16 = vpop.permute.xlu1 %618  ;;  %v617_v54 = vpop.permute.xlu0 %616  ;;  %v3581_v18 = vpack.i.bf16 %v511_v17, %v510_v15 }
  0x94   : > { %v633_v5 = vsel %vm632_vm2, %v617_v54, %v619_v16 }
  0x95   : > { %3582 = vrot.lane.b32.xlu1 %v3581_v18, %s3876_s19  ;;  %3577 = vrot.lane.b32.xlu0 %v3576_v19, %s3877_s27 }
  0x97   : > { %v757_v21 = vpop.permute.xlu1 %756  ;;  %v621_v23 = vpop.permute.xlu0 %620 }
  0x98   : > { %v634_v40 = vsel %vm632_vm2, %v619_v16, %v621_v23  ;;  %v649_v16 = vmul.f32 %v617_v54, %v291_v33 }
  0x99   : > { %v651_v10 = vmul.f32 %v634_v40, %v4272_v61 }
  0x9b   : > { %v761_v24 = vpop.permute.xlu1 %760  ;;  %v759_v29 = vpop.permute.xlu0 %758 }
  0x9c   : > { %v773_v49 = vsel %vm772_vm3, %v757_v21, %v759_v29  ;;  %v774_v50 = vsel %vm772_vm3, %v759_v29, %v761_v24 }
  0x9d   : > { %v790_v25 = vmul.f32 %v773_v49, %v4270_v60  ;;  %v791_v59 = vmul.f32 %v774_v50, %v4272_v61  ;;  %v4347_v50 = vld [vmem:[#allocation2 + $0x20] sm:$0xff] }
  0x9f   : > { %v915_v30 = vpop.permute.xlu1 %914  ;;  %v4292_v31 = vpop.permute.xlu0 %912  ;;  %v3601_v2 = vpack.i.bf16 %v791_v59, %v790_v25 }
  0xa0   : > { %v928_v19 = vsel %vm825_vm4, %v4292_v31, %v915_v30 }
  0xa3   : > { %v343_v37 = vpop.permute.xlu1 %342  ;;  %v4296_v38 = vpop.permute.xlu0 %916 }
  0xa4   : > { %v355_v43 = vsel %vm352_vm0, %v341_v53, %v343_v37  ;;  %v650_v53 = vmul.f32 %v633_v5, %v4270_v60  ;;  %v929_v15 = vsel %vm825_vm4, %v915_v30, %v4296_v38  ;;  %v789_v5 = vmul.f32 %v757_v21, %v291_v33 }
  0xa5   : > { %v372_v45 = vmul.f32 %v355_v43, %v4294_v34  ;;  %v946_v29 = vmul.f32 %v929_v15, %v4294_v34  ;;  %v944_v15 = vmul.f32 %v4292_v31, %v4270_v60 }
  0xa6   : > { %v3596_v63 = vpack.i.bf16 %v651_v10, %v650_v53  ;;  %v945_v10 = vmul.f32 %v928_v19, %v4272_v61 }
  0xa7   : > { %v483_v4 = vpop.permute.xlu1 %482  ;;  %v345_v46 = vpop.permute.xlu0 %344  ;;  %v3586_v48 = vpack.i.bf16 %v372_v45, %v369_v44 }
  0xa8   : > { %v495_v51 = vsel %vm492_vm1, %v481_v3, %v483_v4  ;;  %v3616_v49 = vpack.i.bf16 %v946_v29, %v945_v10  ;;  %v356_v21 = vsel %vm352_vm0, %v343_v37, %v345_v46 }
  0xa9   : > { %v512_v56 = vmul.f32 %v495_v51, %v4294_v34  ;;  %3587 = vrot.lane.b32.xlu0 %v3586_v48, %s3877_s27 }
  0xab   : > { %v4311_v35 = vpop.permute.xlu1 %1050  ;;  %v485_v62 = vpop.permute.xlu0 %484  ;;  %v3591_v47 = vpack.i.bf16 %v512_v56, %v509_v52  ;;  %v373_v56 = vmul.f32 %v356_v21, %v4347_v50 }
  0xac   : > { %v496_v37 = vsel %vm492_vm1, %v483_v4, %v485_v62 }
  0xad   : > { %3592 = vrot.lane.b32.xlu1 %v3591_v47, %s3876_s19  ;;  %3597 = vrot.lane.b32.xlu0 %v3596_v63, %s3875_s17 }
  0xaf   : > { %v4315_v57 = vpop.permute.xlu1 %1054  ;;  %v1053_v0 = vpop.permute.xlu0 %1052 }
  0xb0   : > { %v1066_v25 = vsel %vm685_vm5, %v4311_v35, %v1053_v0 }
  0xb1   : > { %3602 = vrot.lane.b32.xlu1 %v3601_v2, %s3874_s29 }
  0xb3   : > { %v1191_v3 = vpop.permute.xlu1 %1190  ;;  %v4318_v12 = vpop.permute.xlu0 %1188 }
  0xb7   : > { %v4320_v13 = vpop.permute.xlu1 %622  ;;  %v4322_v14 = vpop.permute.xlu0 %1192 }
  0xb8   : > { %v635_v17 = vsel %vm632_vm2, %v621_v23, %v4320_v13  ;;  %v1205_v2 = vsel %vm545_vm6, %v1191_v3, %v4322_v14 }
  0xb9   : > { %v652_v18 = vmul.f32 %v635_v17, %v4294_v34  ;;  %v513_v17 = vmul.f32 %v496_v37, %v4347_v50  ;;  %v1222_v29 = vmul.f32 %v1205_v2, %v4294_v34 }
  0xbb   : > { %v4332_v40 = vpop.permute.xlu1 %762  ;;  %v4334_v43 = vpop.permute.xlu0 %624  ;;  %v3606_v44 = vpack.i.bf16 %v652_v18, %v649_v16  ;;  %v1083_v18 = vmul.f32 %v1066_v25, %v4272_v61 }
  0xbc   : > { %v775_v45 = vsel %vm772_vm3, %v761_v24, %v4332_v40  ;;  %v4350_v24 = vld [vmem:[#allocation2 + $0x28] sm:$0xff] }
  0xbd   : > { %v792_v54 = vmul.f32 %v775_v45, %v4294_v34  ;;  %3607 = vrot.lane.b32.xlu0 %v3606_v44, %s3875_s17 }
  0xbf   : > { %v4341_v23 = vpop.permute.xlu1 %918  ;;  %v4343_v30 = vpop.permute.xlu0 %764  ;;  %v3611_v48 = vpack.i.bf16 %v792_v54, %v789_v5 }
  0xc0   : > { %v930_v52 = vsel %vm825_vm4, %v4296_v38, %v4341_v23  ;;  %v776_v2 = vsel %vm772_vm3, %v4332_v40, %v4343_v30 }
  0xc1   : > { %3612 = vrot.lane.b32.xlu1 %v3611_v48, %s3874_s29  ;;  %3617 = vrot.lane.b32.xlu0 %v3616_v49, %s3873_s28  ;;  %v947_v59 = vmul.f32 %v930_v52, %v4347_v50  ;;  %v793_v40 = vmul.f32 %v776_v2, %v4347_v50 }
  0xc3   : > { %v4352_v33 = vpop.permute.xlu1 %346  ;;  %v4354_v51 = vpop.permute.xlu0 %920  ;;  %v3631_v45 = vpack.i.bf16 %v947_v59, %v944_v15 }
  0xc4   : > { %v357_v53 = vsel %vm352_vm0, %v345_v46, %v4352_v33  ;;  %v1067_v46 = vsel %vm685_vm5, %v1053_v0, %v4315_v57  ;;  %v1204_v0 = vsel %vm545_vm6, %v4318_v12, %v1191_v3 }
  0xc5   : > { %v374_v20 = vmul.f32 %v357_v53, %v4350_v24  ;;  %v1084_v19 = vmul.f32 %v1067_v46, %v4294_v34  ;;  %v1221_v5 = vmul.f32 %v1204_v0, %v4272_v61  ;;  %v931_v0 = vsel %vm825_vm4, %v4341_v23, %v4354_v51 }
  0xc7   : > { %v4367_v47 = vpop.permute.xlu1 %486  ;;  %v4369_v63 = vpop.permute.xlu0 %348  ;;  %v3621_v38 = vpack.i.bf16 %v374_v20, %v373_v56  ;;  %v3641_v48 = vpack.i.bf16 %v1222_v29, %v1221_v5  ;;  %v3636_v3 = vpack.i.bf16 %v1084_v19, %v1083_v18  ;;  %v636_v56 = vsel %vm632_vm2, %v4320_v13, %v4334_v43 }
  0xc8   : > { %v497_v4 = vsel %vm492_vm1, %v485_v62, %v4367_v47  ;;  %v358_v23 = vsel %vm352_vm0, %v4352_v33, %v4369_v63 }
  0xc9   : > { %v514_v16 = vmul.f32 %v497_v4, %v4350_v24  ;;  %3622 = vrot.lane.b32.xlu1 %v3621_v38, %s3877_s27  ;;  %v653_v38 = vmul.f32 %v636_v56, %v4347_v50 }
  0xcb   : > { %v4387_v44 = vpop.permute.xlu1 %1326  ;;  %v489_v62 = vpop.permute.xlu0 %488  ;;  %v3626_v31 = vpack.i.bf16 %v514_v16, %v513_v17  ;;  %v1082_v16 = vmul.f32 %v4311_v35, %v4270_v60  ;;  %v1220_v35 = vmul.f32 %v4318_v12, %v4270_v60 }
  0xcc   : > { %v498_v12 = vsel %vm492_vm1, %v4367_v47, %v489_v62 }
  0xcd   : > { %3632 = vrot.lane.b32.xlu1 %v3631_v45, %s3873_s28  ;;  %3627 = vrot.lane.b32.xlu0 %v3626_v31, %s3876_s19  ;;  %v4445_v31 = vld [vmem:[#allocation2 + $0x30] sm:$0xff] }
  0xcf   : > { %v4392_v10 = vpop.permute.xlu1 %1330  ;;  %v1329_v54 = vpop.permute.xlu0 %1328 }
  0xd1   : > { %3642 = vrot.lane.b32.xlu1 %v3641_v48, %s3871_s13  ;;  %3637 = vrot.lane.b32.xlu0 %v3636_v3, %s3872_s23  ;;  %v948_v48 = vmul.f32 %v931_v0, %v4350_v24 }
  0xd3   : > { %v4396_v49 = vpop.permute.xlu1 %1058  ;;  %v1057_v21 = vpop.permute.xlu0 %1056 }
  0xd4   : > { %v1068_v25 = vsel %vm685_vm5, %v4315_v57, %v1057_v21 }
  0xd5   : > { %v1085_v13 = vmul.f32 %v1068_v25, %v4347_v50 }
  0xd7   : > { %v4398_v52 = vpop.permute.xlu1 %1196  ;;  %v4400_v53 = vpop.permute.xlu0 %1194  ;;  %v3656_v45 = vpack.i.bf16 %v1085_v13, %v1082_v16  ;;  %v515_v13 = vmul.f32 %v498_v12, %v4445_v31 }
  0xd8   : > { %v1206_v57 = vsel %vm545_vm6, %v4322_v14, %v4400_v53 }
  0xd9   : > { %v1223_v19 = vmul.f32 %v1206_v57, %v4347_v50 }
  0xdb   : > { %v4405_v20 = vpop.permute.xlu1 %628  ;;  %v4407_v37 = vpop.permute.xlu0 %626 }
  0xdc   : > { %v637_v59 = vsel %vm632_vm2, %v4334_v43, %v4407_v37 }
  0xdd   : > { %v654_v46 = vmul.f32 %v637_v59, %v4350_v24 }
  0xdf   : > { %v4420_v4 = vpop.permute.xlu1 %768  ;;  %v4422_v15 = vpop.permute.xlu0 %766  ;;  %v3646_v17 = vpack.i.bf16 %v654_v46, %v653_v38  ;;  %v375_v38 = vmul.f32 %v358_v23, %v4445_v31  ;;  %v4464_v46 = vld [vmem:[#allocation2 + $0x38] sm:$0xff] }
  0xe0   : > { %v777_v43 = vsel %vm772_vm3, %v4343_v30, %v4422_v15 }
  0xe1   : > { %v794_v18 = vmul.f32 %v777_v43, %v4350_v24  ;;  %3647 = vrot.lane.b32.xlu0 %v3646_v17, %s3875_s17 }
  0xe3   : > { %v4439_v14 = vpop.permute.xlu1 %924  ;;  %v4441_v29 = vpop.permute.xlu0 %922  ;;  %v3651_v30 = vpack.i.bf16 %v794_v18, %v793_v40  ;;  %v1342_v40 = vsel %vm405_vm7, %v4387_v44, %v1329_v54  ;;  %v1069_v18 = vsel %vm685_vm5, %v1057_v21, %v4396_v49  ;;  %v1207_v21 = vsel %vm545_vm6, %v4400_v53, %v4398_v52 }
  0xe4   : > { %v932_v5 = vsel %vm825_vm4, %v4354_v51, %v4441_v29  ;;  %v3661_v51 = vpack.i.bf16 %v1223_v19, %v1220_v35  ;;  %v638_v53 = vsel %vm632_vm2, %v4407_v37, %v4405_v20 }
  0xe5   : > { %v949_v3 = vmul.f32 %v932_v5, %v4445_v31  ;;  %3652 = vrot.lane.b32.xlu1 %v3651_v30, %s3874_s29  ;;  %3657 = vrot.lane.b32.xlu0 %v3656_v45, %s3872_s23  ;;  %v1359_v30 = vmul.f32 %v1342_v40, %v4272_v61  ;;  %v1086_v5 = vmul.f32 %v1069_v18, %v4350_v24  ;;  %v4527_v18 = vld [vmem:[#allocation2 + $0x40] sm:$0xff] }
  0xe7   : > { %v4459_v56 = vpop.permute.xlu1 %490  ;;  %v4461_v25 = vpop.permute.xlu0 %350  ;;  %v3666_v59 = vpack.i.bf16 %v949_v3, %v948_v48  ;;  %v1358_v48 = vmul.f32 %v4387_v44, %v4270_v60  ;;  %v778_v44 = vsel %vm772_vm3, %v4422_v15, %v4420_v4  ;;  %v933_v15 = vsel %vm825_vm4, %v4441_v29, %v4439_v14 }
  0xe8   : > { %v499_v33 = vsel %vm492_vm1, %v489_v62, %v4459_v56  ;;  %v359_v2 = vsel %vm352_vm0, %v4369_v63, %v4461_v25  ;;  %v1343_v63 = vsel %vm405_vm7, %v1329_v54, %v4392_v10  ;;  %v377_v29 = vmul.f32 %v4527_v18, %v4461_v25 }
  0xe9   : > { %v516_v47 = vmul.f32 %v4464_v46, %v499_v33  ;;  %v376_v17 = vmul.f32 %v4464_v46, %v359_v2  ;;  %3662 = vrot.lane.b32.xlu1 %v3661_v51, %s3871_s13  ;;  %3667 = vrot.lane.b32.xlu0 %v3666_v59, %s3873_s28  ;;  %v1360_v45 = vmul.f32 %v1343_v63, %v4294_v34 }
  0xea   : > { %v1224_v51 = vmul.f32 %v1207_v21, %v4350_v24 }
  0xeb   : > { %v4476_v57 = vpop.permute.xlu1 %1334  ;;  %v1333_v43 = vpop.permute.xlu0 %1332  ;;  %v3671_v16 = vpack.i.bf16 %v376_v17, %v375_v38  ;;  %v3676_v62 = vpack.i.bf16 %v516_v47, %v515_v13  ;;  %v655_v47 = vmul.f32 %v638_v53, %v4445_v31  ;;  %v795_v17 = vmul.f32 %v778_v44, %v4445_v31 }
  0xec   : > { %v1344_v21 = vsel %vm405_vm7, %v4392_v10, %v1333_v43  ;;  %v1345_v25 = vsel %vm405_vm7, %v1333_v43, %v4476_v57 }
  0xed   : > { %3672 = vrot.lane.b32.xlu1 %v3671_v16, %s3877_s27  ;;  %3677 = vrot.lane.b32.xlu0 %v3676_v62, %s3876_s19  ;;  %v1362_v44 = vmul.f32 %v1345_v25, %v4350_v24 }
  0xef   : > { %v4486_v0 = vpop.permute.xlu1 %1062  ;;  %v1061_v19 = vpop.permute.xlu0 %1060 }
  0xf0   : > { %v1070_v35 = vsel %vm685_vm5, %v4396_v49, %v1061_v19 }
  0xf1   : > { %v1087_v54 = vmul.f32 %v1070_v35, %v4445_v31  ;;  %1378 = vrot.lane.b32.xlu1 %v1359_v30, %s3870_s7  ;;  %1380 = vrot.lane.b32.xlu0 %v1360_v45, %s3870_s7  ;;  %v950_v30 = vmul.f32 %v933_v15, %v4464_v46 }
  0xf3   : > { %v4501_v23 = vpop.permute.xlu1 %1200  ;;  %v1199_v3 = vpop.permute.xlu0 %1198  ;;  %v3681_v12 = vpack.i.bf16 %v1087_v54, %v1086_v5 }
  0xf4   : > { %v1208_v49 = vsel %vm545_vm6, %v4398_v52, %v1199_v3  ;;  %v1209_v10 = vsel %vm545_vm6, %v1199_v3, %v4501_v23 }
  0xf5   : > { %v1225_v59 = vmul.f32 %v1208_v49, %v4445_v31  ;;  %1376 = vrot.lane.b32.xlu1 %v1358_v48, %s3870_s7  ;;  %3682 = vrot.lane.b32.xlu0 %v3681_v12, %s3872_s23  ;;  %v1361_v49 = vmul.f32 %v1344_v21, %v4347_v50 }
  0xf7   : > { %v771_v38 = vpop.permute.xlu1 %770  ;;  %v631_v33 = vpop.permute.xlu0 %630  ;;  %v3686_v2 = vpack.i.bf16 %v1225_v59, %v1224_v51  ;;  %v1071_v51 = vsel %vm685_vm5, %v1061_v19, %v4486_v0 }
  0xf8   : > { %v779_v52 = vsel %vm772_vm3, %v4420_v4, %v771_v38  ;;  %v639_v13 = vsel %vm632_vm2, %v4405_v20, %v631_v33  ;;  %v1088_v53 = vmul.f32 %v1071_v51, %v4464_v46 }
  0xf9   : > { %v796_v16 = vmul.f32 %v4464_v46, %v779_v52  ;;  %v656_v37 = vmul.f32 %v4464_v46, %v639_v13  ;;  %3687 = vrot.lane.b32.xlu1 %v3686_v2, %s3871_s13 }
  0xfb   : > { %v1337_v62 = vpop.permute.xlu1 %1336  ;;  %v927_v40 = vpop.permute.xlu0 %926  ;;  %v3696_v4 = vpack.i.bf16 %v796_v16, %v795_v17  ;;  %v3691_v63 = vpack.i.bf16 %v656_v37, %v655_v47  ;;  %v1226_v47 = vmul.f32 %v1209_v10, %v4464_v46  ;;  %v657_v17 = vmul.f32 %v631_v33, %v4527_v18  ;;  %v874_v37 = vld [vmem:[#allocation2 + $0x48] sm:$0xff] }
  0xfc   : > { %v934_v20 = vsel %vm825_vm4, %v4439_v14, %v927_v40  ;;  %v517_v14 = vmul.f32 %v4459_v56, %v4527_v18 }
  0xfd   : > { %v951_v45 = vmul.f32 %v934_v20, %v4527_v18  ;;  %3697 = vrot.lane.b32.xlu1 %v3696_v4, %s3874_s29  ;;  %3692 = vrot.lane.b32.xlu0 %v3691_v63, %s3875_s17  ;;  %v797_v4 = vmul.f32 %v771_v38, %v4527_v18  ;;  %v1346_v63 = vsel %vm405_vm7, %v4476_v57, %v1337_v62 }
  0xfe   : > { %v952_v20 = vmul.f32 %v927_v40, %v874_v37  ;;  %v1823_v40 = vld [vmem:[%s5812_s5] ss:$8 sm:$0xf0] }
  0xff   : > { %v1065_v35 = vpop.permute.xlu1 %1064  ;;  %v1339_v5 = vpop.permute.xlu0 %1338  ;;  %v3701_v54 = vpack.i.bf16 %v951_v45, %v950_v30 }
 0x100   : > { %v1347_v15 = vsel %vm405_vm7, %v1337_v62, %v1339_v5  ;;  %v1072_v30 = vsel %vm685_vm5, %v4486_v0, %v1065_v35 }
 0x101   : > { %403 = vrot.lane.b32.xlu1 %v377_v29, %s3877_s27  ;;  %3702 = vrot.lane.b32.xlu0 %v3701_v54, %s3873_s28  ;;  %v1364_v45 = vmul.f32 %v1347_v15, %v4464_v46  ;;  %v1363_v29 = vmul.f32 %v1346_v63, %v4445_v31  ;;  %v1089_v38 = vmul.f32 %v1072_v30, %v4527_v18  ;;  %v3410_v15 = vld [vmem:[%s5812_s5 + $0x1] ss:$8 sm:$0xf] }
 0x102   : > { %v1090_v54 = vmul.f32 %v1065_v35, %v874_v37 }
 0x103   : > { %v1341_v48 = vpop.permute.xlu1 %1340  ;;  %v1203_v12 = vpop.permute.xlu0 %1202 }
 0x104   : > { %v1210_v33 = vsel %vm545_vm6, %v4501_v23, %v1203_v12  ;;  %v1228_v62 = vmul.f32 %v1203_v12, %v874_v37  ;;  %v1348_v0 = vsel %vm405_vm7, %v1339_v5, %v1341_v48  ;;  %v1822_v23 = vld [vmem:[%s5812_s5] ss:$8 sm:$0xf]  ;;  %v3706_v21 = vpack.i.bf16 %v1090_v54, %v1089_v38 }
 0x105   : > { %1382 = vrot.lane.b32.xlu1 %v1361_v49, %s3870_s7  ;;  %543 = vrot.lane.b32.xlu0 %v517_v14, %s3876_s19  ;;  %v1227_v57 = vmul.f32 %v1210_v33, %v4527_v18  ;;  %v1365_v35 = vmul.f32 %v1348_v0, %v4527_v18  ;;  %v1366_v49 = vmul.f32 %v1341_v48, %v874_v37  ;;  %v1491_v48 = vld [vmem:[%s5809_s2] sm:$0xf] }
 0x106   : > { %v4600_v12 = vor.u32 %v1823_v40, %v1822_v23  ;;  %v3412_v0 = vld [vmem:[%s5812_s5 + $0x2] ss:$8 sm:$0xf] }
 0x107   : > { %v4552_v59 = vpop.permute.xlu1 %3582  ;;  %v4554_v56 = vpop.permute.xlu0 %3577  ;;  %v3711_v14 = vpack.i.bf16 %v1228_v62, %v1227_v57  ;;  %v3413_v23 = vld [vmem:[%s5812_s5 + $0x2] ss:$8 sm:$0xf0] }
 0x108   : > { %v3585_v43 = vunpack.i.h.bf16 %v4552_v59  ;;  %v3584_v2 = vunpack.i.l.bf16 %v4552_v59  ;;  %v3580_v19 = vunpack.i.h.bf16 %v4554_v56  ;;  %v3579_v52 = vunpack.i.l.bf16 %v4554_v56 }
 0x109   : > { %1112 = vrot.lane.b32.xlu1 %v1088_v53, %s3872_s23  ;;  %1384 = vrot.lane.b32.xlu0 %v1362_v44, %s3870_s7  ;;  %v1829_v25 = vrot.slane %v4600_v12, %v3968_v9  ;;  %v1845_v38 = vrot.slane %v4600_v12, %v4079_v42 }
 0x10a   : > { %v407_v3 = vsel %vm405_vm7, %v3579_v52, %v3580_v19  ;;  %v547_v13 = vsel %vm545_vm6, %v3584_v2, %v3585_v43 }
 0x10b   : > { %v3430_v16 = vpack.c.bf16 %v547_v13, %v407_v3  ;;  %v1833_v3 = vrot.slane %v4600_v12, %v3973_v11  ;;  %v1837_v13 = vrot.slane %v4600_v12, %v3965_v8 }
 0x10d   : > { %683 = vrot.lane.b32.xlu1 %v657_v17, %s3875_s17  ;;  %1250 = vrot.lane.b32.xlu0 %v1226_v47, %s3871_s13 }
 0x10e   : > { %3431 = vmatprep.subr.bf16.mxu0 %v3430_v16 }
 0x111   : > { %978 = vrot.lane.b32.xlu1 %v952_v20, %s3873_s28  ;;  %823 = vrot.lane.b32.xlu0 %v797_v4, %s3874_s29  ;;  %v3411_v4 = vld [vmem:[%s5812_s5 + $0x1] ss:$8 sm:$0xf0] }
 0x115   : > { %1388 = vrot.lane.b32.xlu1 %v1364_v45, %s3870_s7  ;;  %1386 = vrot.lane.b32.xlu0 %v1363_v29, %s3870_s7 }
 0x119   : > { %3712 = vrot.lane.b32.xlu1 %v3711_v14, %s3871_s13  ;;  %3707 = vrot.lane.b32.xlu0 %v3706_v21, %s3872_s23  ;;  %v4668_v14 = vor.u32 %v3413_v23, %v3412_v0 }
 0x11b   : > { %v4602_v5 = vpop.permute.xlu0 %3587 }
 0x11c   : > { %v3589_v51 = vunpack.i.l.bf16 %v4602_v5  ;;  %v3590_v23 = vunpack.i.h.bf16 %v4602_v5  ;;  %v3416_v5 = vld [vmem:[%s5812_s5 + $0x5] ss:$8 sm:$0xf] }
 0x11d   : > { %1392 = vrot.lane.b32.xlu1 %v1366_v49, %s3870_s7  ;;  %1390 = vrot.lane.b32.xlu0 %v1365_v35, %s3870_s7 }
 0x11e   : > { %v406_v16 = vsel %vm405_vm7, %v3589_v51, %v3579_v52  ;;  %v4639_v52 = vor.u32 %v3411_v4, %v3410_v15  ;;  %v2103_v51 = vrot.slane %v4668_v14, %v3968_v9 }
 0x11f   : > { %v4612_v10 = vpop.permute.xlu1 %3592  ;;  %v4614_v53 = vpop.permute.xlu0 %3597 }
 0x120   : > { %v3594_v44 = vunpack.i.l.bf16 %v4612_v10  ;;  %v3600_v47 = vunpack.i.h.bf16 %v4614_v53  ;;  %v3599_v17 = vunpack.i.l.bf16 %v4614_v53  ;;  %v1966_v57 = vrot.slane %v4639_v52, %v3968_v9 }
 0x121   : > { %1494 = vperm.xlu0 %3716, %v1491_v48   ;;  %1858 = vrot.lane.b32.xlu1 %v1829_v25, %s3870_s7  ;;  %v1970_v62 = vrot.slane %v4639_v52, %v3973_v11  ;;  %v1974_v40 = vrot.slane %v4639_v52, %v3965_v8  ;;  %v1978_v21 = vrot.slane %v4639_v52, %v4070_v39  ;;  %v3595_v0 = vunpack.i.h.bf16 %v4612_v10 }
 0x122   : > { %v546_v37 = vsel %vm545_vm6, %v3594_v44, %v3584_v2  ;;  %v1841_v2 = vrot.slane %v4600_v12, %v4070_v39  ;;  %v687_v45 = vsel %vm685_vm5, %v3599_v17, %v3600_v47  ;;  %v1982_v49 = vrot.slane %v4639_v52, %v4079_v42 }
 0x123   : > { %v4632_v63 = vpop.permute.xlu1 %3602  ;;  %v3432_v20 = vpack.c.bf16 %v546_v37, %v406_v16  ;;  %v2107_v37 = vrot.slane %v4668_v14, %v3973_v11 }
 0x124   : > { %v3605_v30 = vunpack.i.h.bf16 %v4632_v63  ;;  %v3604_v33 = vunpack.i.l.bf16 %v4632_v63 }
 0x125   : > { %3433 = vmatpush1.bf16.msra.mxu0 %v3432_v20  ;;  %1860 = vrot.lane.b32.xlu1 %v1833_v3, %s3870_s7 }
 0x126   : > { %v827_v29 = vsel %vm825_vm4, %v3604_v33, %v3605_v30  ;;  %1862 = vrot.lane.b32.xlu0 %v1837_v13, %s3870_s7 }
 0x127   : > { %v3434_v54 = vpack.c.bf16 %v827_v29, %v687_v45  ;;  %v3414_v45 = vld [vmem:[%s5812_s5 + $0x3] ss:$8 sm:$0xf] }
 0x128   : > { %v3415_v29 = vld [vmem:[%s5812_s5 + $0x3] ss:$8 sm:$0xf0] }
 0x129   : > { %3435 = vmatprep.subr.bf16.mxu0 %v3434_v54  ;;  %1864 = vrot.lane.b32.xlu1 %v1841_v2, %s3870_s7  ;;  %v2111_v2 = vrot.slane %v4668_v14, %v3965_v8  ;;  %v4707_v54 = vor.u32 %v3415_v29, %v3414_v45 }
 0x12a   : > { %1866 = vrot.lane.b32.xlu0 %v1845_v38, %s3870_s7  ;;  %v2115_v38 = vrot.slane %v4668_v14, %v4070_v39 }
 0x12d   : > { %1995 = vrot.lane.b32.xlu1 %v1966_v57, %s3871_s13  ;;  %v2119_v57 = vrot.slane %v4668_v14, %v4079_v42 }
 0x12e   : > { %1997 = vrot.lane.b32.xlu0 %v1970_v62, %s3871_s13 }
 0x12f   : > { %v4670_v35 = vpop.permute.xlu0 %3607 }
 0x130   : > { %v3609_v25 = vunpack.i.l.bf16 %v4670_v35 }
 0x131   : > { %1999 = vrot.lane.b32.xlu1 %v1974_v40, %s3871_s13 }
 0x132   : > { %2001 = vrot.lane.b32.xlu0 %v1978_v21, %s3871_s13  ;;  %v686_v15 = vsel %vm685_vm5, %v3609_v25, %v3599_v17  ;;  %v2244_v21 = vrot.slane %v4707_v54, %v3973_v11 }
 0x133   : > { %v4679_v48 = vpop.permute.xlu1 %3612  ;;  %v4681_v44 = vpop.permute.xlu0 %3617 }
 0x134   : > { %v3614_v3 = vunpack.i.l.bf16 %v4679_v48  ;;  %v3620_v13 = vunpack.i.h.bf16 %v4681_v44  ;;  %v3619_v16 = vunpack.i.l.bf16 %v4681_v44 }
 0x135   : > { %2003 = vrot.lane.b32.xlu1 %v1982_v49, %s3871_s13 }
 0x136   : > { %v826_v4 = vsel %vm825_vm4, %v3614_v3, %v3604_v33  ;;  %v981_v20 = vsel %vm772_vm3, %v3619_v16, %v3620_v13  ;;  %2132 = vrot.lane.b32.xlu0 %v2103_v51, %s3872_s23  ;;  %v548_v3 = vsel %vm545_vm6, %v3585_v43, %v3595_v0 }
 0x137   : > { %v3436_v17 = vpack.c.bf16 %v826_v4, %v686_v15  ;;  %v3438_v33 = vpack.c.bf16 %v981_v20, %v4272_v61  ;;  %v2240_v61 = vrot.slane %v4707_v54, %v3968_v9  ;;  %v2248_v15 = vrot.slane %v4707_v54, %v3965_v8 }
 0x138   : > { %v2252_v4 = vrot.slane %v4707_v54, %v4070_v39 }
 0x139   : > { %3437 = vmatpush1.bf16.msra.mxu0 %v3436_v17  ;;  %2134 = vrot.lane.b32.xlu1 %v2107_v37, %s3872_s23  ;;  %v3417_v37 = vld [vmem:[%s5812_s5 + $0x5] ss:$8 sm:$0xf0] }
 0x13a   : > { %3439 = vmatprep.subr.bf16.mxu0 %v3438_v33  ;;  %2136 = vrot.lane.b32.xlu0 %v2111_v2, %s3872_s23  ;;  %v408_v2 = vsel %vm405_vm7, %v3580_v19, %v3590_v23 }
 0x13b   : > { %v4712_v62 = vpop.permute.xlu1 %3622  ;;  %v3448_v33 = vpack.c.bf16 %v548_v3, %v408_v2 }
 0x13c   : > { %v3624_v40 = vunpack.i.l.bf16 %v4712_v62 }
 0x13d   : > { %2138 = vrot.lane.b32.xlu1 %v2115_v38, %s3872_s23  ;;  %v4759_v38 = vor.u32 %v3417_v37, %v3416_v5  ;;  %v3418_v37 = vld [vmem:[%s5812_s5 + $0x6] ss:$8 sm:$0xf] }
 0x13e   : > { %2140 = vrot.lane.b32.xlu0 %v2119_v57, %s3872_s23  ;;  %v409_v43 = vsel %vm405_vm7, %v3590_v23, %v3624_v40  ;;  %v2256_v23 = vrot.slane %v4707_v54, %v4079_v42 }
 0x13f   : > { %v4723_v49 = vpop.permute.xlu1 %3632  ;;  %v4725_v25 = vpop.permute.xlu0 %3627  ;;  %v2397_v3 = vrot.slane %v4759_v38, %v3973_v11  ;;  %v2401_v5 = vrot.slane %v4759_v38, %v3965_v8 }
 0x140   : > { %v3634_v10 = vunpack.i.l.bf16 %v4723_v49  ;;  %v3629_v51 = vunpack.i.l.bf16 %v4725_v25 }
 0x141   : > { %2269 = vrot.lane.b32.xlu1 %v2240_v61, %s3873_s28 }
 0x142   : > { %v980_v59 = vsel %vm772_vm3, %v3634_v10, %v3619_v16  ;;  %v549_v20 = vsel %vm545_vm6, %v3595_v0, %v3629_v51  ;;  %2271 = vrot.lane.b32.xlu0 %v2244_v21, %s3873_s28  ;;  %v2393_v10 = vrot.slane %v4759_v38, %v3968_v9 }
 0x143   : > { %v4754_v45 = vpop.permute.xlu1 %3642  ;;  %v4756_v29 = vpop.permute.xlu0 %3637  ;;  %v3440_v16 = vpack.c.bf16 %v980_v59, %v4270_v60  ;;  %v3446_v17 = vpack.c.bf16 %v549_v20, %v409_v43  ;;  %v2409_v43 = vrot.slane %v4759_v38, %v4079_v42 }
 0x144   : > { %v3645_v57 = vunpack.i.h.bf16 %v4754_v45  ;;  %v3644_v0 = vunpack.i.l.bf16 %v4754_v45  ;;  %v3640_v56 = vunpack.i.h.bf16 %v4756_v29  ;;  %v3639_v19 = vunpack.i.l.bf16 %v4756_v29 }
 0x145   : > { %3441 = vmatpush1.bf16.msra.mxu0 %v3440_v16  ;;  %3447 = vmatprep.subr.bf16.mxu1 %v3446_v17  ;;  %v3420_v17 = vld [vmem:[%s5812_s5 + $0x7] ss:$8 sm:$0xf]  ;;  %v1994_v45 = vrot.slane %v4639_v52, %v4226_v41 }
 0x146   : > { %3449 = vmatpush1.bf16.msra.mxu1 %v3448_v33  ;;  %v1119_v61 = vsel %vm632_vm2, %v3639_v19, %v3640_v56  ;;  %v1257_v60 = vsel %vm492_vm1, %v3644_v0, %v3645_v57  ;;  %2273 = vrot.lane.b32.xlu1 %v2248_v15, %s3873_s28  ;;  %v3419_v15 = vld [vmem:[%s5812_s5 + $0x6] ss:$8 sm:$0xf0]  ;;  %v3421_v33 = vld [vmem:[%s5812_s5 + $0x7] ss:$8 sm:$0xf0] }
 0x147   : > { %v3442_v21 = vpack.c.bf16 %v1257_v60, %v1119_v61  ;;  %2275 = vrot.lane.b32.xlu0 %v2252_v4, %s3873_s28  ;;  %v2405_v4 = vrot.slane %v4759_v38, %v4070_v39  ;;  %v4794_v59 = vor.u32 %v3419_v15, %v3418_v37  ;;  %v3615_v61 = vunpack.i.h.bf16 %v4679_v48 }
 0x148   : > { %v4826_v37 = vor.u32 %v3421_v33, %v3420_v17  ;;  %v3635_v15 = vunpack.i.h.bf16 %v4723_v49 }
 0x149   : > { %3443 = vmatprep.subr.bf16.mxu0 %v3442_v21  ;;  %v2530_v20 = vrot.slane %v4794_v59, %v3968_v9  ;;  %v2534_v16 = vrot.slane %v4794_v59, %v3973_v11  ;;  %v3610_v21 = vunpack.i.h.bf16 %v4670_v35 }
 0x14a   : > { %2277 = vrot.lane.b32.xlu1 %v2256_v23, %s3873_s28  ;;  %v2538_v23 = vrot.slane %v4794_v59, %v3965_v8  ;;  %v2667_v33 = vrot.slane %v4826_v37, %v3968_v9  ;;  %v982_v53 = vsel %vm772_vm3, %v3620_v13, %v3635_v15 }
 0x14b   : > { %2422 = vrot.lane.b32.xlu0 %v2393_v10, %s3874_s29  ;;  %v688_v63 = vsel %vm685_vm5, %v3600_v47, %v3610_v21 }
 0x14e   : > { %2424 = vrot.lane.b32.xlu1 %v2397_v3, %s3874_s29 }
 0x14f   : > { %2426 = vrot.lane.b32.xlu0 %v2401_v5, %s3874_s29  ;;  %v2542_v5 = vrot.slane %v4794_v59, %v4070_v39 }
 0x152   : > { %2428 = vrot.lane.b32.xlu1 %v2405_v4, %s3874_s29  ;;  %v828_v4 = vsel %vm825_vm4, %v3605_v30, %v3615_v61  ;;  %v2546_v30 = vrot.slane %v4794_v59, %v4079_v42 }
 0x153   : > { %v4802_v2 = vpop.permute.xlu0 %3647  ;;  %2430 = vrot.lane.b32.xlu0 %v2409_v43, %s3874_s29 }
 0x154   : > { %v5814_v60 = vunpack.i.l.bf16 %v4802_v2 }
 0x156   : > { %2559 = vrot.lane.b32.xlu1 %v2530_v20, %s3875_s17  ;;  %v689_v43 = vsel %vm685_vm5, %v3610_v21, %v5814_v60  ;;  %v3452_v60 = vpack.c.bf16 %v828_v4, %v688_v63 }
 0x157   : > { %v4819_v10 = vpop.permute.xlu1 %3652  ;;  %v4821_v3 = vpop.permute.xlu0 %3657  ;;  %2561 = vrot.lane.b32.xlu0 %v2534_v16, %s3875_s17 }
 0x158   : > { %v3654_v48 = vunpack.i.l.bf16 %v4819_v10  ;;  %v3659_v35 = vunpack.i.l.bf16 %v4821_v3 }
 0x15a   : > { %v829_v20 = vsel %vm825_vm4, %v3615_v61, %v3654_v48  ;;  %2563 = vrot.lane.b32.xlu1 %v2538_v23, %s3875_s17  ;;  %v1118_v47 = vsel %vm632_vm2, %v3659_v35, %v3639_v19  ;;  %v3456_v19 = vpack.c.bf16 %v982_v53, %v4294_v34  ;;  %v3630_v35 = vunpack.i.h.bf16 %v4725_v25 }
 0x15b   : > { %v4841_v16 = vpop.permute.xlu1 %3662  ;;  %v4843_v17 = vpop.permute.xlu0 %3667  ;;  %v3450_v49 = vpack.c.bf16 %v829_v20, %v689_v43  ;;  %2565 = vrot.lane.b32.xlu0 %v2542_v5, %s3875_s17  ;;  %v2671_v43 = vrot.slane %v4826_v37, %v3973_v11  ;;  %v2679_v34 = vrot.slane %v4826_v37, %v4070_v39 }
 0x15c   : > { %v3664_v61 = vunpack.i.l.bf16 %v4841_v16  ;;  %v3669_v23 = vunpack.i.l.bf16 %v4843_v17 }
 0x15d   : > { %3451 = vmatprep.subr.bf16.mxu1 %v3450_v49 }
 0x15e   : > { %3453 = vmatpush1.bf16.msra.mxu1 %v3452_v60  ;;  %v1256_v21 = vsel %vm492_vm1, %v3664_v61, %v3644_v0  ;;  %v983_v5 = vsel %vm772_vm3, %v3635_v15, %v3669_v23  ;;  %2567 = vrot.lane.b32.xlu1 %v2546_v30, %s3875_s17  ;;  %v2675_v0 = vrot.slane %v4826_v37, %v3965_v8 }
 0x15f   : > { %v4867_v4 = vpop.permute.xlu1 %3672  ;;  %v4869_v20 = vpop.permute.xlu0 %3677  ;;  %v3444_v44 = vpack.c.bf16 %v1256_v21, %v1118_v47  ;;  %v3454_v13 = vpack.c.bf16 %v983_v5, %v4347_v50  ;;  %2696 = vrot.lane.b32.xlu0 %v2667_v33, %s3876_s19  ;;  %v3625_v50 = vunpack.i.h.bf16 %v4712_v62  ;;  %v2683_v30 = vrot.slane %v4826_v37, %v4079_v42 }
 0x160   : > { %v3674_v60 = vunpack.i.l.bf16 %v4867_v4  ;;  %v3679_v15 = vunpack.i.l.bf16 %v4869_v20  ;;  %v550_v47 = vsel %vm545_vm6, %v3629_v51, %v3630_v35  ;;  %v3660_v62 = vunpack.i.h.bf16 %v4821_v3 }
 0x161   : > { %3445 = vmatpush1.bf16.msra.mxu0 %v3444_v44  ;;  %3455 = vmatprep.subr.bf16.mxu1 %v3454_v13  ;;  %v1849_v44 = vrot.slane %v4600_v12, %v4149_v1  ;;  %v410_v25 = vsel %vm405_vm7, %v3624_v40, %v3625_v50  ;;  %v1857_v40 = vrot.slane %v4600_v12, %v4226_v41 }
 0x162   : > { %3457 = vmatpush1.bf16.msra.mxu1 %v3456_v19  ;;  %2698 = vrot.lane.b32.xlu1 %v2671_v43, %s3876_s19  ;;  %v411_v61 = vsel %vm405_vm7, %v3625_v50, %v3674_v60  ;;  %v551_v53 = vsel %vm545_vm6, %v3630_v35, %v3679_v15  ;;  %v4905_v43 = vld [vmem:[%s5808_s1] sm:$0xf]  ;;  %v3665_v19 = vunpack.i.h.bf16 %v4841_v16  ;;  %v3464_v35 = vpack.c.bf16 %v550_v47, %v410_v25 }
 0x163   : > { %v1379_v49 = vpop.permute.xlu1 %1378  ;;  %v4881_v63 = vpop.permute.xlu0 %1380  ;;  %2700 = vrot.lane.b32.xlu0 %v2675_v0, %s3876_s19  ;;  %v3462_v13 = vpack.c.bf16 %v551_v53, %v411_v61  ;;  %v1853_v0 = vrot.slane %v4600_v12, %v4158_v6  ;;  %v1986_v50 = vrot.slane %v4639_v52, %v4149_v1  ;;  %v3423_v12 = vld [vmem:[%s5812_s5 + $0x40] ss:$8 sm:$0xf0]  ;;  %v1120_v25 = vsel %vm632_vm2, %v3640_v56, %v3660_v62 }
 0x164   : > { %v1395_v33 = vsel %vm352_vm0, %v1379_v49, %v4881_v63  ;;  %v1258_v3 = vsel %vm492_vm1, %v3645_v57, %v3665_v19  ;;  %v3650_v57 = vunpack.i.h.bf16 %v4802_v2  ;;  %v3670_v56 = vunpack.i.h.bf16 %v4843_v17 }
 0x165   : > { %1517 = vmatprep.subr.mxu0 %v1395_v33  ;;  %v3422_v33 = vld [vmem:[%s5812_s5 + $0x40] ss:$8 sm:$0xf] }
 0x166   : > { %2702 = vrot.lane.b32.xlu1 %v2679_v34, %s3876_s19 }
 0x167   : > { %v1377_v21 = vpop.permute.xlu1 %1376  ;;  %v4900_v5 = vpop.permute.xlu0 %3682  ;;  %2704 = vrot.lane.b32.xlu0 %v2683_v30, %s3876_s19 }
 0x168   : > { %v1394_v51 = vsel %vm352_vm0, %v1377_v21, %v1379_v49  ;;  %v3684_v34 = vunpack.i.l.bf16 %v4900_v5  ;;  %v3655_v49 = vunpack.i.h.bf16 %v4819_v10 }
 0x169   : > { %1518 = vmatpush1.msra.mxu0 %v1394_v51  ;;  %v1990_v51 = vrot.slane %v4639_v52, %v4158_v6 }
 0x16a   : > { %3406 = vmatmul.mubr.msk.f32.vlgmr.msra.gmra.mrb[0].mxu0 %vm1497_vm8, %v4905_v43  ;;  %3463 = vmatprep.subr.bf16.mxu0 %v3462_v13  ;;  %v1121_v61 = vsel %vm632_vm2, %v3660_v62, %v3684_v34  ;;  %v830_v29 = vsel %vm825_vm4, %v3654_v48, %v3655_v49 }
 0x16b   : > { %v4922_v30 = vpop.permute.xlu1 %3687  ;;  %3465 = vmatpush1.bf16.msra.mxu0 %v3464_v35  ;;  %1868 = vrot.lane.b32.xlu1 %v1849_v44, %s3870_s7  ;;  %v4964_v35 = vor.u32 %v3423_v12, %v3422_v33 }
 0x16c   : > { %v3689_v16 = vunpack.i.l.bf16 %v4922_v30  ;;  %1870 = vrot.lane.b32.xlu0 %v1853_v0, %s3870_s7  ;;  %1707 = vmatprep.mubr.f32.mxu0 %v5815_v7 }
 0x16d   : > { %v2804_v33 = vrot.slane %v4964_v35, %v3968_v9  ;;  %v3675_v9 = vunpack.i.h.bf16 %v4867_v4  ;;  %v2123_v4 = vrot.slane %v4668_v14, %v4149_v1 }
 0x16e   : > { %v1259_v53 = vsel %vm492_vm1, %v3665_v19, %v3689_v16  ;;  %v3460_v19 = vpack.c.bf16 %v1258_v3, %v1120_v25 }
 0x16f   : > { %v4951_v47 = vpop.permute.xlu1 %3697  ;;  %v4953_v21 = vpop.permute.xlu0 %3692  ;;  %v3458_v44 = vpack.c.bf16 %v1259_v53, %v1121_v61  ;;  %1872 = vrot.lane.b32.xlu1 %v1857_v40, %s3870_s7  ;;  %v5847_v40 = vunpack.i.l.bf16 %v4802_v2  ;;  %v984_v2 = vsel %vm772_vm3, %v3669_v23, %v3670_v56  ;;  %v2816_v23 = vrot.slane %v4964_v35, %v4070_v39 }
 0x170   : > { %v3699_v13 = vunpack.i.l.bf16 %v4951_v47  ;;  %v3694_v0 = vunpack.i.l.bf16 %v4953_v21  ;;  %2005 = vrot.lane.b32.xlu0 %v1986_v50, %s3871_s13  ;;  %v3472_v17 = vpack.c.bf16 %v984_v2, %v4350_v24 }
 0x171   : > { %3459 = vmatprep.subr.bf16.mxu1 %v3458_v44  ;;  %v690_v50 = vsel %vm685_vm5, %v5847_v40, %v3650_v57 }
 0x172   : > { %3461 = vmatpush1.bf16.msra.mxu1 %v3460_v19  ;;  %v691_v52 = vsel %vm685_vm5, %v3650_v57, %v3694_v0  ;;  %v831_v62 = vsel %vm825_vm4, %v3655_v49, %v3699_v13  ;;  %v3468_v61 = vpack.c.bf16 %v830_v29, %v690_v50  ;;  %v2808_v49 = vrot.slane %v4964_v35, %v3973_v11 }
 0x173   : > { %v404_v3 = vpop.permute.xlu1 %403  ;;  %v4979_v10 = vpop.permute.xlu0 %3702  ;;  %v3466_v48 = vpack.c.bf16 %v831_v62, %v691_v52  ;;  %2007 = vrot.lane.b32.xlu1 %v1990_v51, %s3871_s13  ;;  %v3680_v57 = vunpack.i.h.bf16 %v4869_v20  ;;  %v2812_v11 = vrot.slane %v4964_v35, %v3965_v8  ;;  %v3690_v8 = vunpack.i.h.bf16 %v4922_v30 }
 0x174   : > { %v3704_v12 = vunpack.i.l.bf16 %v4979_v10  ;;  %2009 = vrot.lane.b32.xlu0 %v1994_v45, %s3871_s13  ;;  %v413_v39 = vsel %vm405_vm7, %v3675_v9, %v404_v3  ;;  %v3685_v20 = vunpack.i.h.bf16 %v4900_v5  ;;  %v2820_v52 = vrot.slane %v4964_v35, %v4079_v42 }
 0x175   : > { %3467 = vmatprep.subr.bf16.mxu0 %v3466_v48  ;;  %v552_v19 = vsel %vm545_vm6, %v3679_v15, %v3680_v57  ;;  %v1260_v40 = vsel %vm492_vm1, %v3689_v16, %v3690_v8  ;;  %v3700_v50 = vunpack.i.h.bf16 %v4951_v47  ;;  %v3695_v3 = vunpack.i.h.bf16 %v4953_v21 }
 0x176   : > { %3469 = vmatpush1.bf16.msra.mxu0 %v3468_v61  ;;  %v985_v53 = vsel %vm772_vm3, %v3670_v56, %v3704_v12  ;;  %v2131_v30 = vrot.slane %v4668_v14, %v4226_v41  ;;  %v1122_v16 = vsel %vm632_vm2, %v3684_v34, %v3685_v20  ;;  %v3705_v2 = vunpack.i.h.bf16 %v4979_v10 }
 0x177   : > { %v1383_v44 = vpop.permute.xlu1 %1382  ;;  %v544_v25 = vpop.permute.xlu0 %543  ;;  %v3470_v45 = vpack.c.bf16 %v985_v53, %v4445_v31  ;;  %2833 = vrot.lane.b32.xlu1 %v2804_v33, %s3877_s27  ;;  %v412_v31 = vsel %vm405_vm7, %v3674_v60, %v3675_v9  ;;  %v3476_v53 = vpack.c.bf16 %v1260_v40, %v1122_v16  ;;  %v832_v9 = vsel %vm825_vm4, %v3699_v13, %v3700_v50 }
 0x178   : > { %2835 = vrot.lane.b32.xlu0 %v2808_v49, %s3877_s27  ;;  %v553_v51 = vsel %vm545_vm6, %v3680_v57, %v544_v25  ;;  %v1396_v15 = vsel %vm352_vm0, %v4881_v63, %v1383_v44  ;;  %v3480_v62 = vpack.c.bf16 %v552_v19, %v412_v31  ;;  %v2127_v49 = vrot.slane %v4668_v14, %v4158_v6 }
 0x179   : > { %3471 = vmatprep.subr.bf16.mxu0 %v3470_v45  ;;  %v3478_v60 = vpack.c.bf16 %v553_v51, %v413_v39  ;;  %v692_v5 = vsel %vm685_vm5, %v3694_v0, %v3695_v3  ;;  %v2264_v21 = vrot.slane %v4707_v54, %v4158_v6  ;;  %v986_v13 = vsel %vm772_vm3, %v3704_v12, %v3705_v2 }
 0x17a   : > { %3473 = vmatpush1.bf16.msra.mxu0 %v3472_v17  ;;  %v3484_v47 = vpack.c.bf16 %v832_v9, %v692_v5  ;;  %v3488_v10 = vpack.c.bf16 %v986_v13, %v4464_v46  ;;  %v2421_v46 = vrot.slane %v4759_v38, %v4226_v41  ;;  %v2558_v16 = vrot.slane %v4794_v59, %v4226_v41 }
 0x17b   : > { %v5012_v24 = vpop.permute.xlu1 %1112  ;;  %v1385_v29 = vpop.permute.xlu0 %1384  ;;  %2837 = vrot.lane.b32.xlu1 %v2812_v11, %s3877_s27 }
 0x17c   : > { %v1397_v56 = vsel %vm352_vm0, %v1383_v44, %v1385_v29  ;;  %2839 = vrot.lane.b32.xlu0 %v2816_v23, %s3877_s27  ;;  %v1123_v63 = vsel %vm632_vm2, %v3685_v20, %v5012_v24  ;;  %v2260_v23 = vrot.slane %v4707_v54, %v4149_v1 }
 0x17d   : > { %1588 = vmatprep.subr.mxu1 %v1397_v56 }
 0x17e   : > { %1589 = vmatpush1.msra.mxu1 %v1396_v15 }
 0x17f   : > { %v684_v48 = vpop.permute.xlu1 %683  ;;  %v1251_v33 = vpop.permute.xlu0 %1250  ;;  %3407 = vmatmul.mubr.msk.f32.vlgmr.msra.gmra.mrb[0].mxu1 %vm1497_vm8, %v4905_v43  ;;  %3479 = vmatprep.subr.bf16.mxu1 %v3478_v60 }
 0x180   : > { %v1261_v42 = vsel %vm492_vm1, %v3690_v8, %v1251_v33  ;;  %3481 = vmatpush1.bf16.msra.mxu1 %v3480_v62  ;;  %1778 = vmatprep.mubr.f32.mxu1 %v5815_v7  ;;  %v693_v44 = vsel %vm685_vm5, %v3695_v3, %v684_v48  ;;  %v2268_v8 = vrot.slane %v4707_v54, %v4226_v41 }
 0x181   : > { %v3474_v61 = vpack.c.bf16 %v1261_v42, %v1123_v63  ;;  %2142 = vrot.lane.b32.xlu0 %v2123_v4, %s3872_s23  ;;  %2841 = vrot.lane.b32.xlu1 %v2820_v52, %s3877_s27  ;;  %v2417_v3 = vrot.slane %v4759_v38, %v4158_v6  ;;  %v2550_v63 = vrot.slane %v4794_v59, %v4149_v1 }
 0x183   : > { %v979_v34 = vpop.permute.xlu1 %978  ;;  %v824_v57 = vpop.permute.xlu0 %823  ;;  %3475 = vmatprep.subr.bf16.mxu0 %v3474_v61  ;;  %v2695_v61 = vrot.slane %v4826_v37, %v4226_v41 }
 0x184   : > { %v987_v25 = vsel %vm772_vm3, %v3705_v2, %v979_v34  ;;  %v833_v14 = vsel %vm825_vm4, %v3700_v50, %v824_v57  ;;  %3477 = vmatpush1.bf16.msra.mxu0 %v3476_v53  ;;  %v2828_v2 = vrot.slane %v4964_v35, %v4158_v6  ;;  %v2824_v53 = vrot.slane %v4964_v35, %v4149_v1 }
 0x185   : > { %v3482_v45 = vpack.c.bf16 %v833_v14, %v693_v44  ;;  %2146 = vrot.lane.b32.xlu0 %v2131_v30, %s3872_s23  ;;  %2144 = vrot.lane.b32.xlu1 %v2127_v49, %s3872_s23  ;;  %v3486_v0 = vpack.c.bf16 %v987_v25, %v4527_v18  ;;  %v2413_v18 = vrot.slane %v4759_v38, %v4149_v1 }
 0x186   : > { %v2687_v38 = vrot.slane %v4826_v37, %v4149_v1 }
 0x187   : > { %v1389_v11 = vpop.permute.xlu1 %1388  ;;  %v1387_v17 = vpop.permute.xlu0 %1386  ;;  %3483 = vmatprep.subr.bf16.mxu1 %v3482_v45 }
 0x188   : > { %3485 = vmatpush1.bf16.msra.mxu1 %v3484_v47  ;;  %v1399_v51 = vsel %vm352_vm0, %v1387_v17, %v1389_v11  ;;  %v1398_v31 = vsel %vm352_vm0, %v1385_v29, %v1387_v17 }
 0x189   : > { %1659 = vmatprep.subr.mxu0 %v1399_v51  ;;  %3487 = vmatprep.subr.bf16.mxu1 %v3486_v0 }
 0x18a   : > { %1660 = vmatpush1.msra.mxu0 %v1398_v31  ;;  %2281 = vrot.lane.b32.xlu0 %v2264_v21, %s3873_s28 }
 0x18b   : > { %v3713_v12 = vpop.permute.xlu1 %3712  ;;  %v3708_v19 = vpop.permute.xlu0 %3707  ;;  %3408 = vmatmul.mubr.msk.f32.vlgmr.msra.gmra.mrb[2].mxu0 %vm1497_vm8, %v4905_v43  ;;  %2279 = vrot.lane.b32.xlu1 %v2260_v23, %s3873_s28 }
 0x18c   : > { %v3715_v29 = vunpack.i.h.bf16 %v3713_v12  ;;  %v3714_v39 = vunpack.i.l.bf16 %v3713_v12  ;;  %v3710_v56 = vunpack.i.h.bf16 %v3708_v19  ;;  %v3709_v4 = vunpack.i.l.bf16 %v3708_v19  ;;  %3489 = vmatpush1.bf16.msra.mxu1 %v3488_v10  ;;  %3071 = vmatprep.mubr.f32.mxu0 %v5815_v7 }
 0x18e   : > { %v1262_v20 = vsel %vm492_vm1, %v1251_v33, %v3714_v39  ;;  %v1124_v60 = vsel %vm632_vm2, %v5012_v24, %v3709_v4  ;;  %v1125_v15 = vsel %vm632_vm2, %v3709_v4, %v3710_v56  ;;  %v1263_v52 = vsel %vm492_vm1, %v3714_v39, %v3715_v29  ;;  %2432 = vrot.lane.b32.xlu0 %v2413_v18, %s3874_s29 }
 0x18f   : > { %v1393_v54 = vpop.permute.xlu1 %1392  ;;  %v1391_v62 = vpop.permute.xlu0 %1390  ;;  %v3490_v40 = vpack.c.bf16 %v1263_v52, %v1125_v15  ;;  %v3492_v50 = vpack.c.bf16 %v1262_v20, %v1124_v60  ;;  %2283 = vrot.lane.b32.xlu1 %v2268_v8, %s3873_s28  ;;  %v2554_v24 = vrot.slane %v4794_v59, %v4158_v6 }
 0x190   : > { %v1401_v48 = vsel %vm352_vm0, %v1391_v62, %v1393_v54  ;;  %v1400_v42 = vsel %vm352_vm0, %v1389_v11, %v1391_v62 }
 0x191   : > { %3491 = vmatprep.subr.bf16.mxu1 %v3490_v40 }
 0x192   : > { %3493 = vmatpush1.bf16.msra.mxu1 %v3492_v50  ;;  %2436 = vrot.lane.b32.xlu0 %v2421_v46, %s3874_s29 }
 0x193   : > { %1730 = vmatprep.subr.mxu1 %v1401_v48  ;;  %v5092_v33 = vpop.permute.xlu1 %1858  ;;  %2434 = vrot.lane.b32.xlu1 %v2417_v3, %s3874_s29 }
 0x196   : > { %1731 = vmatpush1.msra.mxu1 %v1400_v42  ;;  %2571 = vrot.lane.b32.xlu0 %v2554_v24, %s3875_s17 }
 0x197   : > { %3409 = vmatmul.mubr.msk.f32.vlgmr.msra.gmra.mrb[2].mxu1 %vm1497_vm8, %v4905_v43  ;;  %v5103_v30 = vpop.permute.xlu1 %1860  ;;  %2569 = vrot.lane.b32.xlu1 %v2550_v63, %s3875_s17  ;;  %v2691_v43 = vrot.slane %v4826_v37, %v4158_v6  ;;  %v2832_v37 = vrot.slane %v4964_v35, %v4226_v41 }
 0x198   : > { %3142 = vmatprep.mubr.f32.mxu1 %v5815_v7 }
 0x19a   : > { %2706 = vrot.lane.b32.xlu0 %v2687_v38, %s3876_s19 }
 0x19b   : > { %v5112_v49 = vpop.permute.xlu1 %1864  ;;  %2573 = vrot.lane.b32.xlu1 %v2558_v16, %s3875_s17 }
 0x19e   : > { %2710 = vrot.lane.b32.xlu0 %v2695_v61, %s3876_s19 }
 0x19f   : > { %v5120_v59 = vpop.permute.xlu1 %1995  ;;  %2708 = vrot.lane.b32.xlu1 %v2691_v43, %s3876_s19 }
 0x1a0   : > { %5848 = vst [vmem:[#allocation13_spill] sm:$0xff] %v5120_v59  ;;  %v5125_v9 = vpop.permute.xlu0 %1494 }
 0x1a2   : > { %2845 = vrot.lane.b32.xlu0 %v2828_v2, %s3877_s27 }
 0x1a3   : > { %v5128_v5 = vpop.permute.xlu1 %1999  ;;  %2843 = vrot.lane.b32.xlu1 %v2824_v53, %s3877_s27 }
 0x1a4   : > { %v5133_v34 = vpop.permute.xlu0 %1862 }
 0x1a7   : > { %v5135_v6 = vpop.permute.xlu1 %2003  ;;  %2847 = vrot.lane.b32.xlu1 %v2832_v37, %s3877_s27 }
 0x1a8   : > { %5849 = vst [vmem:[#allocation14_spill] sm:$0xff] %v5135_v6  ;;  %v5138_v57 = vpop.permute.xlu0 %1866 }
 0x1ab   : > { %v5140_v1 = vpop.permute.xlu1 %2134 }
 0x1ac   : > { %v5142_v44 = vpop.permute.xlu0 %1997 }
 0x1af   : > { %v2139_v25 = vpop.permute.xlu1 %2138 }
 0x1b0   : > { %v5144_v14 = vpop.permute.xlu0 %2001 }
 0x1b3   : > { %v5146_v45 = vpop.permute.xlu1 %2269 }
 0x1b4   : > { %v5148_v47 = vpop.permute.xlu0 %2132 }
 0x1b8   : > { %v2137_v41 = vpop.permute.xlu0 %2136  ;;  %v2274_v35 = vpop.permute.xlu1 %2273 }
 0x1b9   : > { %v5152_v21 = vsel %vm632_vm2, %v5140_v1, %v2137_v41  ;;  %v5155_v13 = vsel %vm632_vm2, %v2137_v41, %v2139_v25 }
 0x1bc   : > { %v2141_v0 = vpop.permute.xlu0 %2140  ;;  %v5157_v11 = vpop.permute.xlu1 %2277 }
 0x1bd   : > { %v5160_v17 = vsel %vm632_vm2, %v2139_v25, %v2141_v0 }
 0x1c0   : > { %v2272_v23 = vpop.permute.xlu0 %2271  ;;  %v5162_v51 = vpop.permute.xlu1 %2424 }
 0x1c1   : > { %v5166_v31 = vsel %vm772_vm3, %v5146_v45, %v2272_v23  ;;  %v5169_v10 = vsel %vm772_vm3, %v2272_v23, %v2274_v35 }
 0x1c4   : > { %v2276_v18 = vpop.permute.xlu0 %2275  ;;  %v2429_v12 = vpop.permute.xlu1 %2428 }
 0x1c5   : > { %v5172_v19 = vsel %vm772_vm3, %v2274_v35, %v2276_v18  ;;  %v5176_v8 = vsel %vm772_vm3, %v2276_v18, %v5157_v11 }
 0x1c8   : > { %v5178_v29 = vpop.permute.xlu0 %2422  ;;  %v5180_v39 = vpop.permute.xlu1 %2559 }
 0x1c9   : > { %5850 = vst [vmem:[#allocation15_spill] sm:$0xff] %v5178_v29  ;;  %5851 = vst [vmem:[#allocation16_spill] sm:$0xff] %v5180_v39 }
 0x1cc   : > { %v2427_v56 = vpop.permute.xlu0 %2426  ;;  %v2564_v4 = vpop.permute.xlu1 %2563 }
 0x1cd   : > { %v5184_v46 = vsel %vm825_vm4, %v5162_v51, %v2427_v56  ;;  %v5187_v20 = vsel %vm825_vm4, %v2427_v56, %v2429_v12 }
 0x1d0   : > { %v2431_v60 = vpop.permute.xlu0 %2430  ;;  %v5192_v52 = vpop.permute.xlu1 %2567 }
 0x1d1   : > { %v5190_v15 = vsel %vm825_vm4, %v2429_v12, %v2431_v60  ;;  %5852 = vst [vmem:[#allocation17_spill] sm:$0xff] %v5192_v52 }
 0x1d4   : > { %v5194_v54 = vpop.permute.xlu0 %2561  ;;  %v5200_v40 = vpop.permute.xlu1 %2698 }
 0x1d5   : > { %v5198_v62 = vsel %vm685_vm5, %v5194_v54, %v2564_v4 }
 0x1d8   : > { %v2566_v50 = vpop.permute.xlu0 %2565  ;;  %v2703_v63 = vpop.permute.xlu1 %2702 }
 0x1d9   : > { %v5203_v3 = vsel %vm685_vm5, %v2564_v4, %v2566_v50  ;;  %v5207_v48 = vsel %vm685_vm5, %v2566_v50, %v5192_v52 }
 0x1dc   : > { %v5209_v24 = vpop.permute.xlu0 %2696 }
 0x1dd   : > { %v5217_v16 = vpop.permute.xlu1 %1868 }
 0x1e0   : > { %v5211_v42 = vpop.permute.xlu0 %2700 }
 0x1e1   : > { %v5215_v38 = vsel %vm545_vm6, %v5211_v42, %v2703_v63  ;;  %v5225_v2 = vpop.permute.xlu1 %1872 }
 0x1e4   : > { %v5219_v61 = vpop.permute.xlu0 %2704 }
 0x1e5   : > { %5853 = vst [vmem:[#allocation18_spill] sm:$0xff] %v5219_v61  ;;  %v5223_v43 = vsel %vm545_vm6, %v2703_v63, %v5219_v61  ;;  %v5236_v41 = vpop.permute.xlu1 %2007 }
 0x1e8   : > { %v5227_v53 = vpop.permute.xlu0 %1870 }
 0x1e9   : > { %v5232_v37 = vsel %vm352_vm0, %v5217_v16, %v5227_v53 }
 0x1ec   : > { %v5234_v25 = vpop.permute.xlu0 %2005 }
 0x1ed   : > { %v5241_v35 = vsel %vm492_vm1, %v5234_v25, %v5236_v41 }
 0x1f0   : > { %v5243_v23 = vpop.permute.xlu0 %2009 }
 0x1f4   : > { %v5245_v18 = vpop.permute.xlu0 %2835 }
 0x1f8   : > { %v5247_v12 = vpop.permute.xlu0 %2839 }
 0x1f9   : > { %5854 = vst [vmem:[#allocation19_spill] sm:$0xff] %v5247_v12 }
 0x1fc   : > { %v5249_v56 = vpop.permute.xlu0 %2142 }
 0x1fd   : > { %5855 = vst [vmem:[#allocation20_spill] sm:$0xff] %v5249_v56  ;;  %v5253_v4 = vsel %vm632_vm2, %v2141_v0, %v5249_v56 }
 0x200   : > { %v5255_v50 = vpop.permute.xlu0 %2146 }
 0x201   : > { %5856 = vst [vmem:[#allocation21_spill] sm:$0xff] %v5255_v50 }
 0x204   : > { %v5257_v63 = vpop.permute.xlu0 %2281 }
 0x205   : > { %5857 = vst [vmem:[#allocation22_spill] sm:$0xff] %v5257_v63 }
 0x208   : > { %v5259_v7 = vpop.permute.xlu0 %2432 }
 0x209   : > { %v5263_v28 = vsel %vm825_vm4, %v2431_v60, %v5259_v7  ;;  %v5274_v60 = vpop.permute.xlu1 %2833 }
 0x20a   : > { %5858 = vst [vmem:[#allocation23_spill] sm:$0xff] %v5263_v28 }
 0x20c   : > { %v5267_v22 = vpop.permute.xlu0 %2436 }
 0x20d   : > { %v2462_v55 = vmul.f32 %v5267_v22, %v5265_v58  ;;  %v2148_v58 = vsel %vm632_vm2, %v5148_v47, %v5140_v1  ;;  %v1875_v1 = vsel %vm352_vm0, %v5103_v30, %v5133_v34 }
 0x20f   : > { %2488 = vrot.lane.b32.xlu1 %v2462_v55, %s3873_s28 }
 0x23d   : > { %v1567_v0 = vpop.f32.mrb[0].mxu0 }
 0x23e   : > { %v1568_v36 = vadd.f32 %v1567_v0, %v5125_v9  ;;  %v1569_v32 = vpop.f32.mrb[1].mxu0 }
 0x23f   : > { %v1570_v27 = vadd.f32 %v1569_v32, %v5125_v9 }
 0x240   : > { %v1785_v26 = vmax.f32 %v1568_v36, 0.0 }
 0x241   : > { %v1786_v61 = vmax.f32 %v1570_v27, 0.0 }
 0x242   : > { %1805 = vst [vmem:[#allocation3 + $0x8] sm:$0xf] %v1785_v26 }
 0x243   : > { %1806 = vst [vmem:[#allocation3 + $0x10] sm:$0xf] %v1786_v61 }
 0x249   : > { %v5276_v63 = vld [vmem:[#allocation3 + $0x8] sm:$0xff] }
 0x24a   : > { %v2865_v55 = vmul.f32 %v5274_v60, %v5276_v63  ;;  %v2728_v0 = vmul.f32 %v5276_v63, %v5209_v24  ;;  %v5285_v56 = vld [vmem:[#allocation3 + $0x10] sm:$0xff]  ;;  %v5288_v27 = vmul.f32 %v5276_v63, %v2148_v58  ;;  %v5298_v32 = vmul.f32 %v5276_v63, %v5166_v31  ;;  %v5310_v31 = vpop.permute.xlu1 %2837 }
 0x24b   : > { %v5292_v26 = vmul.f32 %v5152_v21, %v5285_v56  ;;  %v5302_v36 = vmul.f32 %v5169_v10, %v5285_v56  ;;  %5860 = vst [vmem:[#allocation25_spill] sm:$0xff] %v5310_v31  ;;  %v1874_v10 = vsel %vm352_vm0, %v5092_v33, %v5103_v30  ;;  %v2012_v30 = vsel %vm492_vm1, %v5142_v44, %v5128_v5 }
 0x24c   : > { %2883 = vrot.lane.b32.xlu1 %v2865_v55, %s3870_s7  ;;  %2746 = vrot.lane.b32.xlu0 %v2728_v0, %s3871_s13  ;;  %v1891_v58 = vmul.f32 %v5276_v63, %v1874_v10 }
 0x252   : > { %v1638_v21 = vpop.f32.mrb[0].mxu1 }
 0x253   : > { %v1639_v61 = vadd.f32 %v1638_v21, %v5125_v9  ;;  %v1640_v55 = vpop.f32.mrb[1].mxu1  ;;  %v1892_v21 = vmul.f32 %v1875_v1, %v5285_v56  ;;  %v2013_v1 = vsel %vm492_vm1, %v5128_v5, %v5144_v14 }
 0x254   : > { %v1641_v0 = vadd.f32 %v1640_v55, %v5125_v9  ;;  %v2575_v55 = vsel %vm685_vm5, %v5180_v39, %v5194_v54 }
 0x255   : > { %v1787_v50 = vmax.f32 %v1639_v61, 0.0  ;;  %v1876_v61 = vsel %vm352_vm0, %v5133_v34, %v5112_v49  ;;  %v2014_v34 = vsel %vm492_vm1, %v5144_v14, %v5135_v6  ;;  %v2029_v14 = vmul.f32 %v2012_v30, %v5285_v56 }
 0x256   : > { %v1788_v52 = vmax.f32 %v1641_v0, 0.0  ;;  %v5347_v0 = vpop.permute.xlu1 %2841 }
 0x257   : > { %1807 = vst [vmem:[#allocation3 + $0x18] sm:$0xf] %v1787_v50  ;;  %v2011_v50 = vsel %vm492_vm1, %v5120_v59, %v5142_v44  ;;  %v2850_v44 = vsel %vm405_vm7, %v5245_v18, %v5310_v31  ;;  %5861 = vst [vmem:[#allocation26_spill] sm:$0xff] %v5347_v0  ;;  %v5354_v59 = vmul.f32 %v2575_v55, %v5285_v56 }
 0x258   : > { %1808 = vst [vmem:[#allocation3 + $0x20] sm:$0xf] %v1788_v52  ;;  %v1877_v52 = vsel %vm352_vm0, %v5112_v49, %v5138_v57  ;;  %v2438_v49 = vsel %vm825_vm4, %v5178_v29, %v5162_v51  ;;  %v2028_v28 = vmul.f32 %v5276_v63, %v2011_v50  ;;  %v3717_v0 = vpack.i.bf16 %v1892_v21, %v1891_v58 }
 0x25e   : > { %v1709_v10 = vpop.f32.mrb[2].mxu0  ;;  %v5349_v5 = vld [vmem:[#allocation3 + $0x18] sm:$0xff] }
 0x25f   : > { %v1710_v51 = vadd.f32 %v1709_v10, %v5125_v9  ;;  %v1711_v29 = vpop.f32.mrb[3].mxu0  ;;  %v2867_v54 = vmul.f32 %v2850_v44, %v5349_v5  ;;  %v5358_v39 = vld [vmem:[#allocation3 + $0x20] sm:$0xff]  ;;  %v1893_v31 = vmul.f32 %v5349_v5, %v1876_v61  ;;  %v2030_v50 = vmul.f32 %v5349_v5, %v2013_v1 }
 0x260   : > { %v1712_v12 = vadd.f32 %v1711_v29, %v5125_v9  ;;  %v1894_v6 = vmul.f32 %v1877_v52, %v5358_v39  ;;  %v2167_v30 = vmul.f32 %v5349_v5, %v5155_v13  ;;  %v2168_v44 = vmul.f32 %v5160_v17, %v5358_v39 }
 0x261   : > { %v1789_v55 = vmax.f32 %v1710_v51, 0.0  ;;  %2887 = vrot.lane.b32.xlu0 %v2867_v54, %s3870_s7  ;;  %v2304_v10 = vmul.f32 %v5349_v5, %v5172_v19  ;;  %v2305_v58 = vmul.f32 %v5176_v8, %v5358_v39  ;;  %v2031_v61 = vmul.f32 %v2014_v34, %v5358_v39  ;;  %v5379_v54 = vpop.permute.xlu1 %2144 }
 0x262   : > { %v1790_v29 = vmax.f32 %v1712_v12, 0.0  ;;  %v3722_v21 = vpack.i.bf16 %v1894_v6, %v1893_v31  ;;  %v2593_v52 = vmul.f32 %v5349_v5, %v5198_v62  ;;  %v3742_v13 = vpack.i.bf16 %v2168_v44, %v2167_v30  ;;  %v1813_v30 = vld [vmem:[#allocation3] sm:$0xff] }
 0x263   : > { %1809 = vst [vmem:[#allocation3 + $0x28] sm:$0xf] %v1789_v55  ;;  %v3752_v1 = vpack.i.bf16 %v2305_v58, %v2304_v10  ;;  %v2455_v51 = vmul.f32 %v2438_v49, %v5285_v56  ;;  %v2456_v17 = vmul.f32 %v5349_v5, %v5184_v46  ;;  %v3732_v8 = vpack.i.bf16 %v2031_v61, %v2030_v50 }
 0x264   : > { %1810 = vst [vmem:[#allocation3 + $0x30] sm:$0xf] %v1790_v29  ;;  %3723 = vrot.lane.b32.xlu1 %v3722_v21, %s3877_s27  ;;  %v3762_v6 = vpack.i.bf16 %v2593_v52, %v5354_v59  ;;  %v3727_v62 = vpack.i.bf16 %v2029_v14, %v2028_v28  ;;  %v5393_v59 = vmul.f32 %v5203_v3, %v5358_v39 }
 0x265   : > { %3718 = vrot.lane.b32.xlu0 %v3717_v0, %s3877_s27  ;;  %v3757_v19 = vpack.i.bf16 %v2456_v17, %v2455_v51  ;;  %v5386_v12 = vpop.permute.xlu1 %2279  ;;  %v5403_v14 = vmul.f32 %v5215_v38, %v5358_v39  ;;  %v5419_v38 = vmul.f32 %v5146_v45, %v1813_v30  ;;  %v1878_v58 = vsel %vm352_vm0, %v5138_v57, %v5217_v16 }
 0x266   : > { %v2289_v3 = vsel %vm772_vm3, %v5157_v11, %v5386_v12  ;;  %v5426_v11 = vmul.f32 %v5187_v20, %v5358_v39  ;;  %v5863_v20 = vpack.i.bf16 %v5302_v36, %v5298_v32  ;;  %v1890_v57 = vmul.f32 %v5092_v33, %v1813_v30 }
 0x267   : > { %v1880_v36 = vsel %vm352_vm0, %v5227_v53, %v5225_v2  ;;  %v2017_v52 = vsel %vm492_vm1, %v5236_v41, %v5243_v23 }
 0x268   : > { %3733 = vrot.lane.b32.xlu1 %v3732_v8, %s3876_s19 }
 0x269   : > { %3728 = vrot.lane.b32.xlu0 %v3727_v62, %s3876_s19  ;;  %v5446_v29 = vpop.permute.xlu1 %2283 }
 0x26a   : > { %v1780_v31 = vpop.f32.mrb[2].mxu1  ;;  %v5388_v46 = vld [vmem:[#allocation3 + $0x28] sm:$0xff] }
 0x26b   : > { %v1781_v34 = vadd.f32 %v1780_v31, %v5125_v9  ;;  %v1782_v49 = vpop.f32.mrb[3].mxu1  ;;  %v5397_v0 = vmul.f32 %v5207_v48, %v5388_v46  ;;  %v5407_v50 = vmul.f32 %v5223_v43, %v5388_v46  ;;  %v2306_v10 = vmul.f32 %v2289_v3, %v5388_v46  ;;  %v5454_v16 = vld [vmem:[#allocation3 + $0x30] sm:$0xff] }
 0x26c   : > { %v1783_v28 = vadd.f32 %v1782_v49, %v5125_v9  ;;  %3743 = vrot.lane.b32.xlu1 %v3742_v13, %s3875_s17  ;;  %v5862_v9 = vpack.i.bf16 %v5292_v26, %v5288_v27  ;;  %v5430_v27 = vmul.f32 %v5190_v15, %v5388_v46  ;;  %v2713_v26 = vsel %vm545_vm6, %v5200_v40, %v5211_v42 }
 0x26d   : > { %v1791_v55 = vmax.f32 %v1781_v34, 0.0  ;;  %v3797_v48 = vpack.i.bf16 %v5397_v0, %v5393_v59  ;;  %v3802_v43 = vpack.i.bf16 %v5407_v50, %v5403_v14  ;;  %v3787_v45 = vpack.i.bf16 %v2306_v10, %v5419_v38  ;;  %v2435_v41 = vpop.permute.xlu1 %2434  ;;  %v5866_v59 = vld [vmem:[#allocation25_spill] sm:$0xff]  ;;  %v5869_v10 = vld [vmem:[#allocation23_spill] sm:$0xff] }
 0x26e   : > { %3738 = vrot.lane.b32.xlu0 %v5862_v9, %s3875_s17  ;;  %v1792_v44 = vmax.f32 %v1783_v28, 0.0  ;;  %v3792_v15 = vpack.i.bf16 %v5430_v27, %v5426_v11  ;;  %v2730_v21 = vmul.f32 %v5349_v5, %v2713_v26  ;;  %v1895_v61 = vmul.f32 %v1878_v58, %v5388_v46  ;;  %v5867_v50 = vld [vmem:[#allocation13_spill] sm:$0xff]  ;;  %v5871_v27 = vld [vmem:[#allocation15_spill] sm:$0xff] }
 0x26f   : > { %1811 = vst [vmem:[#allocation3 + $0x38] sm:$0xf] %v1791_v55  ;;  %v2712_v42 = vsel %vm545_vm6, %v5209_v24, %v5200_v40  ;;  %v2169_v24 = vmul.f32 %v5253_v4, %v5388_v46  ;;  %v2033_v53 = vmul.f32 %v5454_v16, %v5241_v35  ;;  %v2849_v4 = vsel %vm405_vm7, %v5274_v60, %v5245_v18  ;;  %v5864_v18 = vld [vmem:[#allocation14_spill] sm:$0xff]  ;;  %v5865_v60 = vld [vmem:[#allocation19_spill] sm:$0xff] }
 0x270   : > { %1812 = vst [vmem:[#allocation3 + $0x40] sm:$0xf] %v1792_v44  ;;  %3753 = vrot.lane.b32.xlu1 %v3752_v1, %s3874_s29  ;;  %v2729_v32 = vmul.f32 %v2712_v42, %v5285_v56  ;;  %v3772_v33 = vpack.i.bf16 %v1895_v61, %v1890_v57  ;;  %v1896_v1 = vmul.f32 %v5454_v16, %v5232_v37  ;;  %v5873_v42 = vld [vmem:[#allocation21_spill] sm:$0xff] }
 0x271   : > { %v2443_v37 = vsel %vm825_vm4, %v5259_v7, %v2435_v41  ;;  %v2444_v62 = vsel %vm825_vm4, %v2435_v41, %v5267_v22  ;;  %v2015_v7 = vsel %vm492_vm1, %v5864_v18, %v5234_v25  ;;  %v2851_v0 = vsel %vm405_vm7, %v5866_v59, %v5865_v60  ;;  %v5868_v25 = vld [vmem:[#allocation26_spill] sm:$0xff]  ;;  %v2570_v38 = vpop.permute.xlu1 %2569 }
 0x272   : > { %3748 = vrot.lane.b32.xlu0 %v5863_v20, %s3874_s29  ;;  %v3767_v40 = vpack.i.bf16 %v2730_v21, %v2729_v32  ;;  %v2868_v28 = vmul.f32 %v2851_v0, %v5358_v39  ;;  %v2032_v14 = vmul.f32 %v2015_v7, %v5388_v46  ;;  %v2027_v3 = vmul.f32 %v5867_v50, %v1813_v30  ;;  %v5872_v20 = vld [vmem:[#allocation16_spill] sm:$0xff]  ;;  %v5877_v0 = vld [vmem:[#allocation18_spill] sm:$0xff] }
 0x273   : > { %v2852_v9 = vsel %vm405_vm7, %v5865_v60, %v5868_v25  ;;  %v2459_v11 = vmul.f32 %v5454_v16, %v5869_v10  ;;  %v2591_v21 = vmul.f32 %v5276_v63, %v5872_v20  ;;  %v2154_v57 = vsel %vm632_vm2, %v5379_v54, %v5873_v42 }
 0x274   : > { %3763 = vrot.lane.b32.xlu1 %v3762_v6, %s3872_s23  ;;  %v2164_v6 = vmul.f32 %v5148_v47, %v1813_v30  ;;  %v2866_v47 = vmul.f32 %v2849_v4, %v5285_v56  ;;  %v3777_v55 = vpack.i.bf16 %v2032_v14, %v2027_v3  ;;  %v2869_v44 = vmul.f32 %v2852_v9, %v5388_v46  ;;  %v5870_v30 = vld [vmem:[#allocation17_spill] sm:$0xff] }
 0x276   : > { %3758 = vrot.lane.b32.xlu0 %v3757_v19, %s3873_s28  ;;  %v5465_v13 = vld [vmem:[#allocation3 + $0x38] sm:$0xff]  ;;  %v3782_v34 = vpack.i.bf16 %v2169_v24, %v2164_v6 }
 0x277   : > { %v1897_v51 = vmul.f32 %v5465_v13, %v1880_v36  ;;  %v2034_v17 = vmul.f32 %v5465_v13, %v2017_v52  ;;  %v5476_v19 = vld [vmem:[#allocation3 + $0x40] sm:$0xff]  ;;  %v5489_v31 = vmul.f32 %v5465_v13, %v2443_v37  ;;  %v2171_v32 = vmul.f32 %v5465_v13, %v2154_v57  ;;  %v5874_v36 = vld [vmem:[#allocation20_spill] sm:$0xff] }
 0x278   : > { %3768 = vrot.lane.b32.xlu1 %v3767_v40, %s3871_s13  ;;  %v2461_v49 = vmul.f32 %v5476_v19, %v2444_v62  ;;  %v2153_v52 = vsel %vm632_vm2, %v5874_v36, %v5379_v54  ;;  %v2572_v40 = vpop.permute.xlu0 %2571  ;;  %v2172_v6 = vmul.f32 %v5476_v19, %v5873_v42 }
 0x279   : > { %v3817_v8 = vpack.i.bf16 %v1897_v51, %v1896_v1  ;;  %v3822_v35 = vpack.i.bf16 %v2034_v17, %v2033_v53  ;;  %v2574_v53 = vpop.permute.xlu1 %2573  ;;  %v2580_v4 = vsel %vm685_vm5, %v2570_v38, %v2572_v40 }
 0x27a   : > { %3773 = vrot.lane.b32.xlu0 %v3772_v33, %s3877_s27  ;;  %v3837_v22 = vpack.i.bf16 %v2461_v49, %v5489_v31  ;;  %v5875_v33 = vld [vmem:[#allocation22_spill] sm:$0xff]  ;;  %v2581_v37 = vsel %vm685_vm5, %v2572_v40, %v2574_v53  ;;  %v5876_v49 = vld [vmem:[#allocation24_spill] sm:$0xff] }
 0x27b   : > { %v2291_v24 = vsel %vm772_vm3, %v5875_v33, %v5446_v29  ;;  %v2290_v51 = vsel %vm772_vm3, %v5386_v12, %v5875_v33  ;;  %v2598_v31 = vmul.f32 %v5476_v19, %v2581_v37  ;;  %v2599_v18 = vmul.f32 %v2574_v53, %v5876_v49 }
 0x27c   : > { %2885 = vrot.lane.b32.xlu1 %v2866_v47, %s3870_s7  ;;  %v2307_v54 = vmul.f32 %v5454_v16, %v2290_v51  ;;  %v2707_v17 = vpop.permute.xlu0 %2706  ;;  %v2597_v47 = vmul.f32 %v5465_v13, %v2580_v4 }
 0x27d   : > { %v2709_v12 = vpop.permute.xlu1 %2708 }
 0x27e   : > { %3783 = vrot.lane.b32.xlu0 %v3782_v34, %s3875_s17  ;;  %v2717_v34 = vsel %vm545_vm6, %v2707_v17, %v2709_v12  ;;  %v3842_v59 = vpack.i.bf16 %v2598_v31, %v2597_v47 }
 0x280   : > { %2889 = vrot.lane.b32.xlu1 %v2868_v28, %s3870_s7  ;;  %v2716_v28 = vsel %vm545_vm6, %v5877_v0, %v2707_v17 }
 0x281   : > { %v2844_v50 = vpop.permute.xlu1 %2843 }
 0x282   : > { %3798 = vrot.lane.b32.xlu0 %v3797_v48, %s3872_s23  ;;  %v2579_v48 = vsel %vm685_vm5, %v5870_v30, %v2570_v38  ;;  %v2853_v38 = vsel %vm405_vm7, %v5868_v25, %v2844_v50  ;;  %v2998_v25 = vld [vmem:[%s5811_s4] sm:$0xf] }
 0x283   : > { %v2596_v26 = vmul.f32 %v5454_v16, %v2579_v48 }
 0x284   : > { %3778 = vrot.lane.b32.xlu1 %v3777_v55, %s3876_s19 }
 0x285   : > { %v3812_v61 = vpack.i.bf16 %v2596_v26, %v2591_v21 }
 0x286   : > { %3803 = vrot.lane.b32.xlu0 %v3802_v43, %s3871_s13  ;;  %v2454_v43 = vmul.f32 %v5276_v63, %v5871_v27 }
 0x288   : > { %3788 = vrot.lane.b32.xlu1 %v3787_v45, %s3874_s29  ;;  %v3807_v58 = vpack.i.bf16 %v2459_v11, %v2454_v43  ;;  %v1898_v45 = vmul.f32 %v5476_v19, %v5225_v2  ;;  %v2170_v2 = vmul.f32 %v5454_v16, %v2153_v52  ;;  %v2870_v11 = vmul.f32 %v2853_v38, %v5454_v16 }
 0x28a   : > { %2891 = vrot.lane.b32.xlu0 %v2869_v44, %s3870_s7  ;;  %v3827_v1 = vpack.i.bf16 %v2171_v32, %v2170_v2  ;;  %v2848_v44 = vpop.permute.xlu1 %2847 }
 0x28b   : > { %v2873_v48 = vmul.f32 %v2848_v44, %v5876_v49 }
 0x28c   : > { %3793 = vrot.lane.b32.xlu1 %v3792_v15, %s3873_s28  ;;  %v2035_v15 = vmul.f32 %v5476_v19, %v5243_v23  ;;  %v2308_v23 = vmul.f32 %v5465_v13, %v2291_v24 }
 0x28e   : > { %3808 = vrot.lane.b32.xlu0 %v3807_v58, %s3873_s28  ;;  %v3832_v41 = vpack.i.bf16 %v2308_v23, %v2307_v54  ;;  %v5591_v43 = vpop.permute.xlu1 %2488 }
 0x290   : > { %3813 = vrot.lane.b32.xlu1 %v3812_v61, %s3872_s23 }
 0x292   : > { %1924 = vrot.lane.b32.xlu0 %v1898_v45, %s3877_s27 }
 0x294   : > { %3818 = vrot.lane.b32.xlu1 %v3817_v8, %s3877_s27  ;;  %v2711_v8 = vpop.permute.xlu0 %2710 }
 0x295   : > { %v2718_v62 = vsel %vm545_vm6, %v2709_v12, %v2711_v8  ;;  %v2736_v60 = vmul.f32 %v2711_v8, %v5876_v49 }
 0x296   : > { %2061 = vrot.lane.b32.xlu0 %v2035_v15, %s3876_s19  ;;  %v2735_v7 = vmul.f32 %v2718_v62, %v5476_v19 }
 0x298   : > { %3823 = vrot.lane.b32.xlu1 %v3822_v35, %s3876_s19  ;;  %v2309_v35 = vmul.f32 %v5476_v19, %v5446_v29  ;;  %v2734_v29 = vmul.f32 %v5465_v13, %v2717_v34  ;;  %v2846_v14 = vpop.permute.xlu0 %2845  ;;  %v3852_v3 = vpack.i.bf16 %v2736_v60, %v2735_v7  ;;  %s253_s19 = scalar_lea.vmem %s5813_s6, %s3389_s18 }
 0x299   : > { %v2854_v55 = vsel %vm405_vm7, %v2844_v50, %v2846_v14  ;;  %v2855_v30 = vsel %vm405_vm7, %v2846_v14, %v2848_v44 }
 0x29a   : > { %3828 = vrot.lane.b32.xlu0 %v3827_v1, %s3875_s17  ;;  %v2871_v10 = vmul.f32 %v2854_v55, %v5465_v13  ;;  %v2872_v27 = vmul.f32 %v2855_v30, %v5476_v19 }
 0x29c   : > { %2198 = vrot.lane.b32.xlu1 %v2172_v6, %s3875_s17 }
 0x29e   : > { %3833 = vrot.lane.b32.xlu0 %v3832_v41, %s3874_s29 }
 0x2a0   : > { %2335 = vrot.lane.b32.xlu1 %v2309_v35, %s3874_s29 }
 0x2a2   : > { %3838 = vrot.lane.b32.xlu0 %v3837_v22, %s3873_s28  ;;  %v2733_v22 = vmul.f32 %v5454_v16, %v2716_v28 }
 0x2a4   : > { %2625 = vrot.lane.b32.xlu1 %v2599_v18, %s3872_s23  ;;  %v3847_v9 = vpack.i.bf16 %v2734_v29, %v2733_v22 }
 0x2a6   : > { %3843 = vrot.lane.b32.xlu0 %v3842_v59, %s3872_s23 }
 0x2a8   : > { %3853 = vrot.lane.b32.xlu1 %v3852_v3, %s3871_s13 }
 0x2aa   : > { %3848 = vrot.lane.b32.xlu0 %v3847_v9, %s3871_s13 }
 0x2ac   : > { %2895 = vrot.lane.b32.xlu1 %v2871_v10, %s3870_s7 }
 0x2ae   : > { %2893 = vrot.lane.b32.xlu0 %v2870_v11, %s3870_s7 }
 0x2b0   : > { %2899 = vrot.lane.b32.xlu1 %v2873_v48, %s3870_s7 }
 0x2b2   : > { %2897 = vrot.lane.b32.xlu0 %v2872_v27, %s3870_s7 }
 0x2b6   : > { %3001 = vperm.xlu0 %3716, %v2998_v25  }
 0x2be   : > { %v5593_v26 = vpop.permute.xlu0 %2746  ;;  %v5595_v58 = vpop.permute.xlu1 %2883 }
 0x2d3   : > { %v5597_v20 = vpop.permute.xlu0 %2887 }
 0x2d6   : > { %v5599_v21 = vpop.permute.xlu1 %3723 }
 0x2d7   : > { %v3719_v61 = vpop.permute.xlu0 %3718  ;;  %v3726_v45 = vunpack.i.h.bf16 %v5599_v21  ;;  %v3725_v42 = vunpack.i.l.bf16 %v5599_v21  ;;  %v5726_v21 = vld [vmem:[%s5810_s3] sm:$0xf] }
 0x2d8   : > { %v3721_v57 = vunpack.i.h.bf16 %v3719_v61  ;;  %v3720_v15 = vunpack.i.l.bf16 %v3719_v61 }
 0x2d9   : > { %v1929_v1 = vsel %vm405_vm7, %v3725_v42, %v3726_v45 }
 0x2da   : > { %v5603_v32 = vpop.permute.xlu1 %3733  ;;  %v1928_v24 = vsel %vm405_vm7, %v3721_v57, %v3725_v42  ;;  %v1927_v17 = vsel %vm405_vm7, %v3720_v15, %v3721_v57 }
 0x2db   : > { %v3736_v36 = vunpack.i.h.bf16 %v5603_v32  ;;  %v3735_v52 = vunpack.i.l.bf16 %v5603_v32  ;;  %v3729_v40 = vpop.permute.xlu0 %3728 }
 0x2dc   : > { %v3731_v2 = vunpack.i.h.bf16 %v3729_v40  ;;  %v3730_v33 = vunpack.i.l.bf16 %v3729_v40 }
 0x2dd   : > { %v2066_v23 = vsel %vm545_vm6, %v3735_v52, %v3736_v36 }
 0x2de   : > { %v2065_v51 = vsel %vm545_vm6, %v3731_v2, %v3735_v52  ;;  %v5615_v53 = vpop.permute.xlu1 %3743  ;;  %v3510_v54 = vpack.c.bf16 %v2066_v23, %v1929_v1  ;;  %v2064_v6 = vsel %vm545_vm6, %v3730_v33, %v3731_v2 }
 0x2df   : > { %v3512_v41 = vpack.c.bf16 %v2065_v51, %v1928_v24  ;;  %v3494_v37 = vpack.c.bf16 %v2064_v6, %v1927_v17  ;;  %v3746_v12 = vunpack.i.h.bf16 %v5615_v53  ;;  %v3745_v8 = vunpack.i.l.bf16 %v5615_v53 }
 0x2e0   : > { %v3739_v4 = vpop.permute.xlu0 %3738  ;;  %3511 = vmatprep.subr.bf16.mxu1 %v3510_v54 }
 0x2e1   : > { %3495 = vmatprep.subr.bf16.mxu0 %v3494_v37  ;;  %3513 = vmatpush1.bf16.msra.mxu1 %v3512_v41  ;;  %v3741_v35 = vunpack.i.h.bf16 %v3739_v4  ;;  %v2203_v18 = vsel %vm685_vm5, %v3745_v8, %v3746_v12  ;;  %v3740_v11 = vunpack.i.l.bf16 %v3739_v4 }
 0x2e2   : > { %v5621_v62 = vpop.permute.xlu1 %3753 }
 0x2e3   : > { %v3756_v47 = vunpack.i.h.bf16 %v5621_v62  ;;  %v3755_v31 = vunpack.i.l.bf16 %v5621_v62  ;;  %v2202_v60 = vsel %vm685_vm5, %v3741_v35, %v3745_v8  ;;  %v2201_v1 = vsel %vm685_vm5, %v3740_v11, %v3741_v35 }
 0x2e4   : > { %v3749_v34 = vpop.permute.xlu0 %3748 }
 0x2e5   : > { %v3751_v49 = vunpack.i.h.bf16 %v3749_v34  ;;  %v2340_v7 = vsel %vm825_vm4, %v3755_v31, %v3756_v47  ;;  %v3750_v44 = vunpack.i.l.bf16 %v3749_v34 }
 0x2e6   : > { %v5633_v29 = vpop.permute.xlu1 %3763  ;;  %v3514_v0 = vpack.c.bf16 %v2340_v7, %v2203_v18 }
 0x2e7   : > { %v2339_v59 = vsel %vm825_vm4, %v3751_v49, %v3755_v31  ;;  %v2338_v42 = vsel %vm825_vm4, %v3750_v44, %v3751_v49  ;;  %v3766_v8 = vunpack.i.h.bf16 %v5633_v29  ;;  %v3765_v35 = vunpack.i.l.bf16 %v5633_v29 }
 0x2e8   : > { %v3516_v28 = vpack.c.bf16 %v2339_v59, %v2202_v60  ;;  %v3759_v14 = vpop.permute.xlu0 %3758  ;;  %3515 = vmatprep.subr.bf16.mxu1 %v3514_v0  ;;  %v3498_v54 = vpack.c.bf16 %v2338_v42, %v2201_v1 }
 0x2e9   : > { %v3761_v48 = vunpack.i.h.bf16 %v3759_v14  ;;  %v3760_v27 = vunpack.i.l.bf16 %v3759_v14 }
 0x2ea   : > { %3517 = vmatpush1.bf16.msra.mxu1 %v3516_v28  ;;  %v5635_v50 = vpop.permute.xlu1 %3768 }
 0x2eb   : > { %v2491_v17 = vsel %vm772_vm3, %v3760_v27, %v3761_v48  ;;  %v3771_v6 = vunpack.i.h.bf16 %v5635_v50 }
 0x2ec   : > { %v5637_v22 = vpop.permute.xlu0 %3773  ;;  %v3502_v49 = vpack.c.bf16 %v2491_v17, %v5285_v56 }
 0x2ed   : > { %v3775_v10 = vunpack.i.l.bf16 %v5637_v22 }
 0x2ee   : > { %v5639_v3 = vpop.permute.xlu1 %2885 }
 0x2ef   : > { %v1926_v57 = vsel %vm405_vm7, %v3775_v10, %v3720_v15  ;;  %v3770_v15 = vunpack.i.l.bf16 %v5635_v50 }
 0x2f0   : > { %v5641_v55 = vpop.permute.xlu0 %3783 }
 0x2f1   : > { %v3785_v52 = vunpack.i.l.bf16 %v5641_v55  ;;  %v2765_v14 = vsel %vm492_vm1, %v3770_v15, %v3771_v6  ;;  %v2764_v1 = vsel %vm492_vm1, %v5593_v26, %v3770_v15  ;;  %v2902_v26 = vsel %vm352_vm0, %v5639_v3, %v5597_v20 }
 0x2f2   : > { %v5643_v9 = vpop.permute.xlu1 %2889 }
 0x2f3   : > { %v2200_v41 = vsel %vm685_vm5, %v3785_v52, %v3740_v11  ;;  %v2628_v52 = vsel %vm632_vm2, %v3765_v35, %v3766_v8 }
 0x2f4   : > { %v5645_v38 = vpop.permute.xlu0 %3798 }
 0x2f5   : > { %v3801_v18 = vunpack.i.h.bf16 %v5645_v38  ;;  %v3800_v7 = vunpack.i.l.bf16 %v5645_v38 }
 0x2f6   : > { %v5648_v30 = vpop.permute.xlu1 %3778 }
 0x2f7   : > { %v3780_v25 = vunpack.i.l.bf16 %v5648_v30 }
 0x2f8   : > { %v5651_v61 = vpop.permute.xlu0 %3803 }
 0x2f9   : > { %v2063_v40 = vsel %vm545_vm6, %v3780_v25, %v3730_v33  ;;  %v3806_v33 = vunpack.i.h.bf16 %v5651_v61  ;;  %v3805_v4 = vunpack.i.l.bf16 %v5651_v61 }
 0x2fa   : > { %v3496_v2 = vpack.c.bf16 %v2063_v40, %v1926_v57  ;;  %v5657_v24 = vpop.permute.xlu1 %3788  ;;  %v2630_v40 = vsel %vm632_vm2, %v3800_v7, %v3801_v18 }
 0x2fb   : > { %v3790_v23 = vunpack.i.l.bf16 %v5657_v24  ;;  %v2767_v50 = vsel %vm492_vm1, %v3805_v4, %v3806_v33 }
 0x2fc   : > { %v5661_v51 = vpop.permute.xlu0 %2891  ;;  %3497 = vmatpush1.bf16.msra.mxu0 %v3496_v2  ;;  %v2766_v2 = vsel %vm492_vm1, %v3771_v6, %v3805_v4  ;;  %v3781_v4 = vunpack.i.h.bf16 %v5648_v30  ;;  %v2901_v30 = vsel %vm352_vm0, %v5595_v58, %v5639_v3 }
 0x2fd   : > { %v2337_v37 = vsel %vm825_vm4, %v3790_v23, %v3750_v44  ;;  %3499 = vmatprep.subr.bf16.mxu0 %v3498_v54  ;;  %v2629_v23 = vsel %vm632_vm2, %v3766_v8, %v3800_v7 }
 0x2fe   : > { %v3500_v31 = vpack.c.bf16 %v2337_v37, %v2200_v41  ;;  %v5672_v34 = vpop.permute.xlu1 %3793  ;;  %v3524_v41 = vpack.c.bf16 %v2766_v2, %v2629_v23 }
 0x2ff   : > { %v3796_v60 = vunpack.i.h.bf16 %v5672_v34  ;;  %v3795_v59 = vunpack.i.l.bf16 %v5672_v34 }
 0x300   : > { %v5679_v0 = vpop.permute.xlu0 %3808  ;;  %3501 = vmatpush1.bf16.msra.mxu0 %v3500_v31 }
 0x301   : > { %v3810_v28 = vunpack.i.l.bf16 %v5679_v0  ;;  %v2492_v29 = vsel %vm772_vm3, %v3761_v48, %v3795_v59  ;;  %3503 = vmatprep.subr.bf16.mxu0 %v3502_v49  ;;  %v2493_v56 = vsel %vm772_vm3, %v3795_v59, %v3796_v60  ;;  %v3811_v2 = vunpack.i.h.bf16 %v5679_v0 }
 0x302   : > { %v3520_v44 = vpack.c.bf16 %v2492_v29, %v5349_v5  ;;  %v5692_v11 = vpop.permute.xlu1 %3813  ;;  %v3518_v25 = vpack.c.bf16 %v2493_v56, %v5358_v39  ;;  %v3506_v5 = vpack.c.bf16 %v2765_v14, %v2628_v52 }
 0x303   : > { %v2490_v10 = vsel %vm772_vm3, %v3810_v28, %v3760_v27  ;;  %v3815_v42 = vunpack.i.l.bf16 %v5692_v11  ;;  %v3522_v27 = vpack.c.bf16 %v2767_v50, %v2630_v40  ;;  %v3791_v28 = vunpack.i.h.bf16 %v5657_v24 }
 0x304   : > { %v3504_v48 = vpack.c.bf16 %v2490_v10, %v5276_v63  ;;  %v1925_v57 = vpop.permute.xlu0 %1924  ;;  %3519 = vmatprep.subr.bf16.mxu1 %v3518_v25  ;;  %v3776_v63 = vunpack.i.h.bf16 %v5637_v22  ;;  %v2904_v22 = vsel %vm352_vm0, %v5643_v9, %v5661_v51 }
 0x305   : > { %v2627_v39 = vsel %vm632_vm2, %v3815_v42, %v3765_v35  ;;  %3521 = vmatpush1.bf16.msra.mxu1 %v3520_v44  ;;  %v2903_v35 = vsel %vm352_vm0, %v5597_v20, %v5643_v9  ;;  %v3786_v20 = vunpack.i.h.bf16 %v5641_v55  ;;  %v2341_v42 = vsel %vm825_vm4, %v3756_v47, %v3791_v28 }
 0x306   : > { %3505 = vmatpush1.bf16.msra.mxu0 %v3504_v48  ;;  %v3508_v54 = vpack.c.bf16 %v2764_v1, %v2627_v39  ;;  %v3819_v17 = vpop.permute.xlu1 %3818  ;;  %3523 = vmatprep.subr.bf16.mxu1 %v3522_v27  ;;  %v1930_v15 = vsel %vm405_vm7, %v3726_v45, %v3776_v63  ;;  %v2067_v45 = vsel %vm545_vm6, %v3736_v36, %v3781_v4  ;;  %v5878_v48 = vmov 0.0  }
 0x307   : > { %3507 = vmatprep.subr.bf16.mxu0 %v3506_v5  ;;  %v3821_v37 = vunpack.i.h.bf16 %v3819_v17  ;;  %v3820_v31 = vunpack.i.l.bf16 %v3819_v17  ;;  %v3528_v24 = vpack.c.bf16 %v2067_v45, %v1930_v15 }
 0x308   : > { %v2062_v6 = vpop.permute.xlu0 %2061 }
 0x309   : > { %3525 = vmatpush1.bf16.msra.mxu1 %v3524_v41  ;;  %v1932_v58 = vsel %vm405_vm7, %v3820_v31, %v3821_v37  ;;  %v1931_v3 = vsel %vm405_vm7, %v3776_v63, %v3820_v31  ;;  %v1933_v55 = vsel %vm405_vm7, %v3821_v37, %v1925_v57  ;;  %v2204_v57 = vsel %vm685_vm5, %v3746_v12, %v3786_v20 }
 0x30a   : > { %3509 = vmatpush1.bf16.msra.mxu0 %v3508_v54  ;;  %v3824_v8 = vpop.permute.xlu1 %3823  ;;  %3094 = vmatprep.subr.mxu1 %v2904_v22  ;;  %v3532_v47 = vpack.c.bf16 %v2341_v42, %v2204_v57  ;;  %v2494_v41 = vsel %vm772_vm3, %v3796_v60, %v3811_v2 }
 0x30b   : > { %3023 = vmatprep.subr.mxu0 %v2902_v26  ;;  %v3826_v49 = vunpack.i.h.bf16 %v3824_v8  ;;  %v3825_v7 = vunpack.i.l.bf16 %v3824_v8  ;;  %v3536_v60 = vpack.c.bf16 %v2494_v41, %v5388_v46  ;;  %v3816_v8 = vunpack.i.h.bf16 %v5692_v11 }
 0x30c   : > { %v3829_v59 = vpop.permute.xlu0 %3828 }
 0x30d   : > { %v2069_v9 = vsel %vm545_vm6, %v3825_v7, %v3826_v49  ;;  %3095 = vmatpush1.msra.mxu1 %v2903_v35  ;;  %v2068_v29 = vsel %vm545_vm6, %v3781_v4, %v3825_v7  ;;  %v2070_v56 = vsel %vm545_vm6, %v3826_v49, %v2062_v6  ;;  %v3830_v32 = vunpack.i.l.bf16 %v3829_v59 }
 0x30e   : > { %3024 = vmatpush1.msra.mxu0 %v2901_v30  ;;  %v3544_v14 = vpack.c.bf16 %v2069_v9, %v1932_v58  ;;  %v2199_v50 = vpop.permute.xlu1 %2198  ;;  %3425 = vmatmul.mubr.msk.f32.vlgmr.msra.gmra.mrb[4].mxu1 %vm1497_vm8, %v5726_v21  ;;  %v3526_v36 = vpack.c.bf16 %v2068_v29, %v1931_v3  ;;  %v3831_v44 = vunpack.i.h.bf16 %v3829_v59  ;;  %v3542_v25 = vpack.c.bf16 %v2070_v56, %v1933_v55 }
 0x30f   : > { %3424 = vmatmul.mubr.msk.f32.vlgmr.msra.gmra.mrb[4].mxu0 %vm1497_vm8, %v5726_v21  ;;  %3284 = vmatprep.mubr.f32.mxu1 %v5878_v48  ;;  %v2205_v1 = vsel %vm685_vm5, %v3786_v20, %v3830_v32 }
 0x310   : > { %v3834_v10 = vpop.permute.xlu0 %3833  ;;  %3213 = vmatprep.mubr.f32.mxu0 %v5878_v48  ;;  %3527 = vmatprep.subr.bf16.mxu0 %v3526_v36  ;;  %v2207_v39 = vsel %vm685_vm5, %v3831_v44, %v2199_v50  ;;  %v2206_v54 = vsel %vm685_vm5, %v3830_v32, %v3831_v44 }
 0x311   : > { %v3836_v52 = vunpack.i.h.bf16 %v3834_v10  ;;  %v3835_v40 = vunpack.i.l.bf16 %v3834_v10  ;;  %3543 = vmatprep.subr.bf16.mxu1 %v3542_v25  ;;  %3529 = vmatpush1.bf16.msra.mxu0 %v3528_v24 }
 0x312   : > { %3545 = vmatpush1.bf16.msra.mxu1 %v3544_v14  ;;  %v2336_v27 = vpop.permute.xlu1 %2335 }
 0x313   : > { %v2343_v5 = vsel %vm825_vm4, %v3835_v40, %v3836_v52  ;;  %v2342_v62 = vsel %vm825_vm4, %v3791_v28, %v3835_v40  ;;  %v2344_v63 = vsel %vm825_vm4, %v3836_v52, %v2336_v27  ;;  %v5880_v27 = vld [vmem:[#allocation6_spill] sm:$0xff] }
 0x314   : > { %v3839_v0 = vpop.permute.xlu0 %3838  ;;  %v3530_v23 = vpack.c.bf16 %v2342_v62, %v2205_v1  ;;  %v3546_v53 = vpack.c.bf16 %v2344_v63, %v2207_v39  ;;  %v3548_v6 = vpack.c.bf16 %v2343_v5, %v2206_v54  ;;  %v5881_v62 = vld [vmem:[#allocation7_spill] sm:$0xff]  ;;  %v5882_v39 = vld [vmem:[#allocation8_spill] sm:$0xff] }
 0x315   : > { %v3841_v17 = vunpack.i.h.bf16 %v3839_v0  ;;  %v3840_v12 = vunpack.i.l.bf16 %v3839_v0 }
 0x316   : > { %3531 = vmatprep.subr.bf16.mxu0 %v3530_v23  ;;  %v2626_v37 = vpop.permute.xlu1 %2625  ;;  %3547 = vmatprep.subr.bf16.mxu1 %v3546_v53 }
 0x317   : > { %v2496_v4 = vsel %vm772_vm3, %v3840_v12, %v3841_v17  ;;  %3533 = vmatpush1.bf16.msra.mxu0 %v3532_v47  ;;  %v2495_v31 = vsel %vm772_vm3, %v3811_v2, %v3840_v12  ;;  %v2497_v26 = vsel %vm772_vm3, %v3841_v17, %v5591_v43  ;;  %3549 = vmatpush1.bf16.msra.mxu1 %v3548_v6 }
 0x318   : > { %v3844_v22 = vpop.permute.xlu0 %3843  ;;  %v3534_v15 = vpack.c.bf16 %v2495_v31, %v5454_v16  ;;  %v3550_v34 = vpack.c.bf16 %v2497_v26, %v5476_v19  ;;  %v3552_v30 = vpack.c.bf16 %v2496_v4, %v5465_v13  ;;  %v2631_v16 = vsel %vm632_vm2, %v3801_v18, %v3816_v8 }
 0x319   : > { %v3846_v35 = vunpack.i.h.bf16 %v3844_v22  ;;  %v3845_v49 = vunpack.i.l.bf16 %v3844_v22 }
 0x31a   : > { %3535 = vmatprep.subr.bf16.mxu0 %v3534_v15  ;;  %3551 = vmatprep.subr.bf16.mxu1 %v3550_v34  ;;  %v3854_v7 = vpop.permute.xlu1 %3853  ;;  %v5883_v15 = vld [vmem:[#allocation9_spill] sm:$0xff] }
 0x31b   : > { %3537 = vmatpush1.bf16.msra.mxu0 %v3536_v60  ;;  %v3856_v59 = vunpack.i.h.bf16 %v3854_v7  ;;  %v3855_v43 = vunpack.i.l.bf16 %v3854_v7  ;;  %3553 = vmatpush1.bf16.msra.mxu1 %v3552_v30  ;;  %v2633_v11 = vsel %vm632_vm2, %v3845_v49, %v3846_v35  ;;  %v2634_v13 = vsel %vm632_vm2, %v3846_v35, %v2626_v37  ;;  %v5884_v60 = vld [vmem:[#allocation11_spill] sm:$0xff]  ;;  %v5885_v30 = vld [vmem:[#allocation10_spill] sm:$0xff] }
 0x31c   : > { %v3849_v45 = vpop.permute.xlu0 %3848  ;;  %v2632_v58 = vsel %vm632_vm2, %v3816_v8, %v3845_v49  ;;  %v5886_v49 = vld [vmem:[#allocation12_spill] sm:$0xff] }
 0x31d   : > { %v3851_v19 = vunpack.i.h.bf16 %v3849_v45  ;;  %v3850_v46 = vunpack.i.l.bf16 %v3849_v45  ;;  %v2771_v28 = vsel %vm492_vm1, %v3855_v43, %v3856_v59 }
 0x31e   : > { %v2896_v9 = vpop.permute.xlu1 %2895  ;;  %v3554_v38 = vpack.c.bf16 %v2771_v28, %v2634_v13 }
 0x31f   : > { %v2770_v3 = vsel %vm492_vm1, %v3851_v19, %v3855_v43  ;;  %v2768_v20 = vsel %vm492_vm1, %v3806_v33, %v3850_v46  ;;  %v2769_v18 = vsel %vm492_vm1, %v3850_v46, %v3851_v19 }
 0x320   : > { %v3540_v29 = vpack.c.bf16 %v2768_v20, %v2631_v16  ;;  %v3556_v56 = vpack.c.bf16 %v2770_v3, %v2633_v11  ;;  %v2894_v14 = vpop.permute.xlu0 %2893  ;;  %v3538_v32 = vpack.c.bf16 %v2769_v18, %v2632_v58  ;;  %3555 = vmatprep.subr.bf16.mxu1 %v3554_v38 }
 0x321   : > { %v2906_v36 = vsel %vm352_vm0, %v2894_v14, %v2896_v9  ;;  %v2905_v24 = vsel %vm352_vm0, %v5661_v51, %v2894_v14  ;;  %v5879_v51 = vld [vmem:[#allocation5_spill] sm:$0xff] }
 0x322   : > { %3539 = vmatprep.subr.bf16.mxu0 %v3538_v32  ;;  %3557 = vmatpush1.bf16.msra.mxu1 %v3556_v56  ;;  %v2900_v50 = vpop.permute.xlu1 %2899 }
 0x323   : > { %3541 = vmatpush1.bf16.msra.mxu0 %v3540_v29 }
 0x324   : > { %v2898_v55 = vpop.permute.xlu0 %2897  ;;  %3165 = vmatprep.subr.mxu0 %v2906_v36 }
 0x325   : > { %v2907_v61 = vsel %vm352_vm0, %v2896_v9, %v2898_v55  ;;  %v2908_v33 = vsel %vm352_vm0, %v2898_v55, %v2900_v50 }
 0x326   : > { %3236 = vmatprep.subr.mxu1 %v2908_v33 }
 0x327   : > { %3166 = vmatpush1.msra.mxu0 %v2905_v24  ;;  %3237 = vmatpush1.msra.mxu1 %v2907_v61 }
 0x328   : > { %3426 = vmatmul.mubr.msk.f32.vlgmr.msra.gmra.mrb[6].mxu0 %vm1497_vm8, %v5726_v21  ;;  %3427 = vmatmul.mubr.msk.f32.vlgmr.msra.gmra.mrb[6].mxu1 %vm1497_vm8, %v5726_v21 }
 0x335   : > { %v3002_v44 = vpop.permute.xlu0 %3001 }
 0x3e1   : > { %v3144_v25 = vpop.f32.mrb[4].mxu1 }
 0x3e2   : > { %v3073_v10 = vpop.f32.mrb[4].mxu0  ;;  %v3145_v42 = vadd.f32 %v3144_v25, %v3002_v44  ;;  %v3146_v40 = vpop.f32.mrb[5].mxu1 }
 0x3e3   : > { %v3074_v48 = vadd.f32 %v3073_v10, %v3002_v44  ;;  %v3075_v52 = vpop.f32.mrb[5].mxu0  ;;  %v3147_v57 = vadd.f32 %v3146_v40, %v3002_v44 }
 0x3e4   : > { %v3076_v2 = vadd.f32 %v3075_v52, %v3002_v44  ;;  %v3293_v1 = vadd.f32 %v3145_v42, %v5880_v27 }
 0x3e5   : > { %v3291_v5 = vadd.f32 %v3074_v48, %v5879_v51  ;;  %v3294_v63 = vadd.f32 %v3147_v57, %v5882_v39 }
 0x3e6   : > { %v3292_v47 = vadd.f32 %v3076_v2, %v5881_v62  ;;  %v3301_v21 = vmax.f32 %v3293_v1, 0.0 }
 0x3e7   : > { %v3299_v0 = vmax.f32 %v3291_v5, 0.0  ;;  %v3302_v54 = vmax.f32 %v3294_v63, 0.0 }
 0x3e8   : > { %v3300_v23 = vmax.f32 %v3292_v47, 0.0 }
 0x3e9   : > { %v3316_v17 = vcombine.low %v3301_v21, %v3302_v54 }
 0x3ea   : > { %v3315_v53 = vcombine.low %v3299_v0, %v3300_v23 }
 0x3eb   : > { %3324 = vst [vmem:[%s253_s19 + $0x8] sm:$0xff] %v3316_v17 }
 0x3ec   : > { %3323 = vst [vmem:[%s253_s19] sm:$0xff] %v3315_v53 }
 0x3fb   : > { %v3215_v12 = vpop.f32.mrb[6].mxu0  ;;  %v3286_v41 = vpop.f32.mrb[6].mxu1 }
 0x3fc   : > { %v3216_v6 = vadd.f32 %v3215_v12, %v3002_v44  ;;  %v3287_v4 = vadd.f32 %v3286_v41, %v3002_v44  ;;  %v3217_v37 = vpop.f32.mrb[7].mxu0  ;;  %v3288_v31 = vpop.f32.mrb[7].mxu1 }
 0x3fd   : > { %v3218_v26 = vadd.f32 %v3217_v37, %v3002_v44  ;;  %v3289_v22 = vadd.f32 %v3288_v31, %v3002_v44 }
 0x3fe   : > { %v3295_v34 = vadd.f32 %v3216_v6, %v5883_v15  ;;  %v3297_v8 = vadd.f32 %v3287_v4, %v5884_v60 }
 0x3ff   : > { %v3296_v35 = vadd.f32 %v3218_v26, %v5885_v30  ;;  %v3298_v7 = vadd.f32 %v3289_v22, %v5886_v49 }
 0x400   : > { %v3303_v59 = vmax.f32 %v3295_v34, 0.0  ;;  %v3305_v43 = vmax.f32 %v3297_v8, 0.0 }
 0x401   : > { %v3304_v45 = vmax.f32 %v3296_v35, 0.0  ;;  %v3306_v16 = vmax.f32 %v3298_v7, 0.0 }
 0x403   : > { %v3317_v19 = vcombine.low %v3303_v59, %v3304_v45  ;;  %v3318_v46 = vcombine.low %v3305_v43, %v3306_v16 }
 0x405   : > { %3325 = vst [vmem:[%s253_s19 + $0x10] sm:$0xff] %v3317_v19  ;;  %3326 = vst [vmem:[%s253_s19 + $0x18] sm:$0xff] %v3318_v46 }
 0x406 PF: > { %s16_s21 = sadd.s32 1, %s3867_s21  }
 0x407   : > { %p13_p4 = scmp.ge.s32.totalorder %s16_s21, 4  }
 0x409   :  { %15 = sbr.rel (!%p13_p4) target bundleno = 1 (0x1), region = 81 }

</bundles_post_ra>
